<compile_context>
chip_gen: v6e
topology: v6e:2x2x1
jax: 0.10.0
libtpu: 0.0.40
codegen_flags: <defaults>
</compile_context>

<pallas_src>
import jax
import jax.numpy as jnp
import numpy as np
from jax.experimental import pallas as pl
from jax.experimental.pallas import tpu as pltpu

# ---- module-implied constants (134 stations, 163 = 12 + 7 + T) ----
P = 8                    # history steps
D = 32                   # correlation dimension
T = 144                  # time-of-day slots; linear_time is Linear(163,1) => 12+7+T == 163
N = 134                  # number of turbines / stations
C_W = 7                  # weather channels
C_T = 12 + 7 + T         # = 163

BLOCK_B = 8                       # max batch elements per grid step (16 is fine on v5e/v6e)
VMEM_LIMIT = 32 * 1024 * 1024     # ~12 MB double-buffered footprint at BLOCK_B=8


def _embed_kernel(se_ref, te_ref, we_ref, ws_ref, ww_ref,
                  se_out_ref, twe_ref, swe_ref, stwe_ref):
    # se_ref : (BB, P, N)        spatial history, N on lanes
    # te_ref : (BB, D, 1)        precomputed temporal embedding, D on sublanes
    # we_ref : (BB, C_W, P, N)   weather history, N on lanes
    # ws_ref : (D, P)            spatial nn.Linear weight (out, in), used as-is
    # ww_ref : (D, P)            weather nn.Linear weight (out, in), used as-is
    # outputs (lane-dense): se (BB,1,D,N); twe/swe/stwe (BB,C_W,D,N)
    bb = se_ref.shape[0]
    n = se_ref.shape[2]
    d = ws_ref.shape[0]
    n_ch = we_ref.shape[1]

    ws = ws_ref[...]          # hoist weight loads out of the batch loop
    ww = ww_ref[...]

    def body(b, carry):
        # spatial embedding: (D,P) @ (P,N) -> (D,N), long axis on lanes
        se_emb = jnp.dot(ws, se_ref[b], preferred_element_type=jnp.float32)
        # temporal embedding lane-broadcast (D,1) -> (D,N), once per batch element
        te_dn = jnp.broadcast_to(te_ref[b], (d, n))
        se_te = se_emb + te_dn                       # shared partial sum
        se_out_ref[b, 0] = se_emb
        # per-channel weather dots, consumed immediately (no (952,32) materialization)
        for c in range(n_ch):
            we_c = jnp.dot(ww, we_ref[b, c], preferred_element_type=jnp.float32)
            twe_ref[b, c] = te_dn + we_c
            swe_ref[b, c] = se_emb + we_c
            stwe_ref[b, c] = se_te + we_c
        return carry

    jax.lax.fori_loop(0, bb, body, 0, unroll=True)


def _pick_block_b(batch, block_b):
    """Block size <= block_b, <= ceil(batch/2) (>=2 grid steps when batch >= 2),
    preferring an exact divisor of `batch` so no batch padding / dead work is needed."""
    target = max(1, min(block_b, -(-batch // 2)))
    for cand in range(target, max(0, target - 4), -1):
        if batch % cand == 0:
            return cand
    return target


def _embedding_forward(SE, TE, WE, Ws, Wt, Wtime, Ww, *, block_b=BLOCK_B):
    """Forward of the PyTorch `Embedding` module.

    SE: (B, N, P) float; TE: (B, P, 3) int; WE: (B, P, N, C_W) float.
    Ws/Wt/Ww: (D, P) nn.Linear weights (out, in); Wtime: (1, 163).
    Returns (SE_emb (B,1,N,D), TWE, SWE, STWE (B,C_W,N,D)).
    """
    B = SE.shape[0]
    SE = SE.astype(jnp.float32)
    WE = WE.astype(jnp.float32)
    Ws = Ws.astype(jnp.float32)
    Ww = Ww.astype(jnp.float32)

    # --- temporal path (tiny) stays in XLA: linear_time(163->1) after linear(P->D)
    #     collapses to  te[b,d] = sum_p (onehot[b,p,:] . wtime) * Wt[d,p]
    #     (the % wrapping matches the PyTorch module, which also applies % before one_hot)
    month = jax.nn.one_hot(TE[..., 0] % 12, 12, dtype=jnp.float32)
    dow   = jax.nn.one_hot(TE[..., 1] % 7, 7, dtype=jnp.float32)
    tod   = jax.nn.one_hot(TE[..., 2] % T, T, dtype=jnp.float32)
    onehot = jnp.concatenate([month, dow, tod], axis=-1)                    # (B, P, 163)
    weighted = jnp.einsum('bpc,c->bp', onehot, Wtime[0].astype(jnp.float32),
                          precision='highest')                              # (B, P)
    te_emb = jnp.einsum('bp,dp->bd', weighted, Wt.astype(jnp.float32),
                        precision='highest')                                # (B, D)
    te_emb = te_emb[:, :, None]                                             # (B, D, 1)

    # --- lane-dense input layout prep (small; wrapper-side, never inside the kernel)
    se_t = jnp.transpose(SE, (0, 2, 1))                                     # (B, P, N)
    we_t = jnp.transpose(WE, (0, 3, 1, 2))                                  # (B, C_W, P, N)

    # --- batch blocking ---
    bb = _pick_block_b(B, block_b)
    n_steps = -(-B // bb)
    b_pad = n_steps * bb
    if b_pad != B:
        pad = ((0, b_pad - B),)
        se_t = jnp.pad(se_t, pad + ((0, 0), (0, 0)))
        te_emb = jnp.pad(te_emb, pad + ((0, 0), (0, 0)))
        we_t = jnp.pad(we_t, pad + ((0, 0), (0, 0), (0, 0)))

    out_shapes = (
        jax.ShapeDtypeStruct((b_pad, 1, D, N), jnp.float32),
        jax.ShapeDtypeStruct((b_pad, C_W, D, N), jnp.float32),
        jax.ShapeDtypeStruct((b_pad, C_W, D, N), jnp.float32),
        jax.ShapeDtypeStruct((b_pad, C_W, D, N), jnp.float32),
    )

    outs = pl.pallas_call(
        _embed_kernel,
        out_shape=out_shapes,
        grid=(n_steps,),
        in_specs=[
            pl.BlockSpec((bb, P, N), lambda i: (i, 0, 0)),
            pl.BlockSpec((bb, D, 1), lambda i: (i, 0, 0)),
            pl.BlockSpec((bb, C_W, P, N), lambda i: (i, 0, 0, 0)),
            pl.BlockSpec((D, P), lambda i: (0, 0)),
            pl.BlockSpec((D, P), lambda i: (0, 0)),
        ],
        out_specs=(
            pl.BlockSpec((bb, 1, D, N), lambda i: (i, 0, 0, 0)),
            pl.BlockSpec((bb, C_W, D, N), lambda i: (i, 0, 0, 0)),
            pl.BlockSpec((bb, C_W, D, N), lambda i: (i, 0, 0, 0)),
            pl.BlockSpec((bb, C_W, D, N), lambda i: (i, 0, 0, 0)),
        ),
        compiler_params=pltpu.CompilerParams(
            dimension_semantics=("parallel",),
            vmem_limit_bytes=VMEM_LIMIT,
        ),
    )(se_t, te_emb, we_t, Ws, Ww)

    se_o, twe_o, swe_o, stwe_o = outs
    if b_pad != B:
        se_o, twe_o, swe_o, stwe_o = (x[:B] for x in (se_o, twe_o, swe_o, stwe_o))

    # back to the PyTorch (..., 134, D) layout with one cheap XLA transpose each
    tr = lambda x: jnp.transpose(x, (0, 1, 3, 2))
    return tr(se_o), tr(twe_o), tr(swe_o), tr(stwe_o)


embedding_forward = jax.jit(_embedding_forward, static_argnames=("block_b",))


def reference_forward(SE, TE, WE, Ws, Wt, Wtime, Ww):
    """Plain-JAX reference reproducing the PyTorch forward (full-f32 precision)."""
    SE = SE.astype(jnp.float32)
    WE = WE.astype(jnp.float32)
    se_emb = jnp.einsum('bnp,dp->bnd', SE, Ws, precision='highest')[:, None]     # (B,1,N,D)
    month = jax.nn.one_hot(TE[..., 0] % 12, 12, dtype=jnp.float32)
    dow   = jax.nn.one_hot(TE[..., 1] % 7, 7, dtype=jnp.float32)
    tod   = jax.nn.one_hot(TE[..., 2] % T, T, dtype=jnp.float32)
    oh = jnp.concatenate([month, dow, tod], axis=-1)                             # (B,P,163)
    weighted = jnp.einsum('bpc,c->bp', oh, Wtime[0], precision='highest')
    te_emb = jnp.einsum('bp,dp->bd', weighted, Wt, precision='highest')[:, None, None]
    we_emb = jnp.einsum('bpnc,dp->bcnd', WE, Ww, precision='highest')            # (B,C,N,D)
    return se_emb, te_emb + we_emb, se_emb + we_emb, se_emb + te_emb + we_emb


if __name__ == "__main__":
    key = jax.random.PRNGKey(0)
    k_se, k_te, k_we, k_ws, k_wt, k_wtime, k_ww = jax.random.split(key, 7)

    B = 2
    SE = jax.random.normal(k_se, (B, N, P), dtype=jnp.float32)
    TE = jax.random.randint(k_te, (B, P, 3), 0, 1000, dtype=jnp.int32)
    WE = jax.random.normal(k_we, (B, P, N, C_W), dtype=jnp.float32)

    # PyTorch nn.Linear weight convention: (out_features, in_features), no bias.
    Ws    = jax.random.normal(k_ws,    (D, P), dtype=jnp.float32) / np.sqrt(P)
    Wt    = jax.random.normal(k_wt,    (D, P), dtype=jnp.float32) / np.sqrt(P)
    Wtime = jax.random.normal(k_wtime, (1, C_T), dtype=jnp.float32) / np.sqrt(C_T)
    Ww    = jax.random.normal(k_ww,    (D, P), dtype=jnp.float32) / np.sqrt(P)

    outs = jax.block_until_ready(embedding_forward(SE, TE, WE, Ws, Wt, Wtime, Ww))
    refs = reference_forward(SE, TE, WE, Ws, Wt, Wtime, Ww)

    for name, o, r in zip(("SE", "TWE", "SWE", "STWE"), outs, refs):
        assert o.shape == r.shape, (name, o.shape, r.shape)
        np.testing.assert_allclose(np.asarray(o), np.asarray(r), rtol=1e-3, atol=1e-3)

    print("KERNEL_OK")
</pallas_src>

<mosaic_0001>
module attributes {stable_mosaic.version = 11 : i64} {
  func.func @_embed_kernel(%arg0: i32, %arg1: memref<1x8x134xf32, #tpu.memory_space<vmem>>, %arg2: memref<1x32x1xf32, #tpu.memory_space<vmem>>, %arg3: memref<1x7x8x134xf32, #tpu.memory_space<vmem>>, %arg4: memref<32x8xf32, #tpu.memory_space<vmem>>, %arg5: memref<32x8xf32, #tpu.memory_space<vmem>>, %arg6: memref<1x1x32x134xf32, #tpu.memory_space<vmem>>, %arg7: memref<1x7x32x134xf32, #tpu.memory_space<vmem>>, %arg8: memref<1x7x32x134xf32, #tpu.memory_space<vmem>>, %arg9: memref<1x7x32x134xf32, #tpu.memory_space<vmem>>) attributes {dimension_semantics = [#tpu.dimension_semantics<parallel>], iteration_bounds = array<i64: 2>, scalar_prefetch = 0 : i64, scratch_operands = 0 : i64, tpu.core_type = #tpu.core_type<tc>, window_params = [{transform_indices = @transform_0, window_bounds = array<i64: 1, 8, 134>}, {transform_indices = @transform_1, window_bounds = array<i64: 1, 32, 1>}, {transform_indices = @transform_2, window_bounds = array<i64: 1, 7, 8, 134>}, {pipeline_mode = #tpu.pipeline_mode<synchronous>, transform_indices = @transform_3, window_bounds = array<i64: 32, 8>}, {pipeline_mode = #tpu.pipeline_mode<synchronous>, transform_indices = @transform_4, window_bounds = array<i64: 32, 8>}, {transform_indices = @transform_5, window_bounds = array<i64: 1, 1, 32, 134>}, {transform_indices = @transform_6, window_bounds = array<i64: 1, 7, 32, 134>}, {transform_indices = @transform_7, window_bounds = array<i64: 1, 7, 32, 134>}, {transform_indices = @transform_8, window_bounds = array<i64: 1, 7, 32, 134>}]} {
    %c0 = arith.constant 0 : index
    %c0_0 = arith.constant 0 : index
    %0 = vector.load %arg4[%c0, %c0_0] : memref<32x8xf32, #tpu.memory_space<vmem>>, vector<32x8xf32>
    %c0_1 = arith.constant 0 : index
    %c0_2 = arith.constant 0 : index
    %1 = vector.load %arg5[%c0_1, %c0_2] : memref<32x8xf32, #tpu.memory_space<vmem>>, vector<32x8xf32>
    %c0_i32 = arith.constant 0 : i32
    %2 = arith.index_cast %c0_i32 : i32 to index
    %c0_3 = arith.constant 0 : index
    %c0_4 = arith.constant 0 : index
    %3 = vector.load %arg1[%2, %c0_3, %c0_4] : memref<1x8x134xf32, #tpu.memory_space<vmem>>, vector<1x8x134xf32>
    %4 = vector.shape_cast %3 : vector<1x8x134xf32> to vector<8x134xf32>
    %cst = arith.constant dense<0.000000e+00> : vector<32x134xf32>
    %5 = tpu.matmul %0, %4, %cst {dimension_numbers = #tpu.dot_dimension_numbers<[1], [0], [0], [1], [0, 0, 1, 1], [], []>} : vector<32x8xf32>, vector<8x134xf32>, vector<32x134xf32> -> vector<32x134xf32>
    %6 = arith.index_cast %c0_i32 : i32 to index
    %c0_5 = arith.constant 0 : index
    %c0_6 = arith.constant 0 : index
    %7 = vector.load %arg2[%6, %c0_5, %c0_6] : memref<1x32x1xf32, #tpu.memory_space<vmem>>, vector<1x32x1xf32>
    %8 = vector.shape_cast %7 : vector<1x32x1xf32> to vector<32x1xf32>
    %9 = vector.shape_cast %8 : vector<32x1xf32> to vector<32x1xf32>
    %10 = vector.broadcast %9 : vector<32x1xf32> to vector<32x134xf32>
    %11 = arith.addf %5, %10 : vector<32x134xf32>
    %12 = arith.index_cast %c0_i32 : i32 to index
    %c0_7 = arith.constant 0 : index
    %c0_8 = arith.constant 0 : index
    %c0_9 = arith.constant 0 : index
    %13 = vector.load %arg6[%12, %c0_7, %c0_8, %c0_9] : memref<1x1x32x134xf32, #tpu.memory_space<vmem>>, vector<1x1x32x134xf32>
    %14 = vector.shape_cast %13 : vector<1x1x32x134xf32> to vector<32x134xf32>
    %15 = vector.shape_cast %5 : vector<32x134xf32> to vector<1x1x32x134xf32>
    tpu.vector_store %arg6[%12, %c0_7, %c0_8, %c0_9], %15 {strides = array<i32>} : memref<1x1x32x134xf32, #tpu.memory_space<vmem>>, vector<1x1x32x134xf32>,
    %16 = arith.index_cast %c0_i32 : i32 to index
    %c0_10 = arith.constant 0 : index
    %c0_11 = arith.constant 0 : index
    %c0_12 = arith.constant 0 : index
    %17 = vector.load %arg3[%16, %c0_10, %c0_11, %c0_12] : memref<1x7x8x134xf32, #tpu.memory_space<vmem>>, vector<1x1x8x134xf32>
    %18 = vector.shape_cast %17 : vector<1x1x8x134xf32> to vector<8x134xf32>
    %cst_13 = arith.constant dense<0.000000e+00> : vector<32x134xf32>
    %19 = tpu.matmul %1, %18, %cst_13 {dimension_numbers = #tpu.dot_dimension_numbers<[1], [0], [0], [1], [0, 0, 1, 1], [], []>} : vector<32x8xf32>, vector<8x134xf32>, vector<32x134xf32> -> vector<32x134xf32>
    %20 = arith.addf %10, %19 : vector<32x134xf32>
    %21 = arith.index_cast %c0_i32 : i32 to index
    %c0_14 = arith.constant 0 : index
    %c0_15 = arith.constant 0 : index
    %c0_16 = arith.constant 0 : index
    %22 = vector.load %arg7[%21, %c0_14, %c0_15, %c0_16] : memref<1x7x32x134xf32, #tpu.memory_space<vmem>>, vector<1x1x32x134xf32>
    %23 = vector.shape_cast %22 : vector<1x1x32x134xf32> to vector<32x134xf32>
    %24 = vector.shape_cast %20 : vector<32x134xf32> to vector<1x1x32x134xf32>
    tpu.vector_store %arg7[%21, %c0_14, %c0_15, %c0_16], %24 {strides = array<i32>} : memref<1x7x32x134xf32, #tpu.memory_space<vmem>>, vector<1x1x32x134xf32>,
    %25 = arith.addf %5, %19 : vector<32x134xf32>
    %26 = arith.index_cast %c0_i32 : i32 to index
    %c0_17 = arith.constant 0 : index
    %c0_18 = arith.constant 0 : index
    %c0_19 = arith.constant 0 : index
    %27 = vector.load %arg8[%26, %c0_17, %c0_18, %c0_19] : memref<1x7x32x134xf32, #tpu.memory_space<vmem>>, vector<1x1x32x134xf32>
    %28 = vector.shape_cast %27 : vector<1x1x32x134xf32> to vector<32x134xf32>
    %29 = vector.shape_cast %25 : vector<32x134xf32> to vector<1x1x32x134xf32>
    tpu.vector_store %arg8[%26, %c0_17, %c0_18, %c0_19], %29 {strides = array<i32>} : memref<1x7x32x134xf32, #tpu.memory_space<vmem>>, vector<1x1x32x134xf32>,
    %30 = arith.addf %11, %19 : vector<32x134xf32>
    %31 = arith.index_cast %c0_i32 : i32 to index
    %c0_20 = arith.constant 0 : index
    %c0_21 = arith.constant 0 : index
    %c0_22 = arith.constant 0 : index
    %32 = vector.load %arg9[%31, %c0_20, %c0_21, %c0_22] : memref<1x7x32x134xf32, #tpu.memory_space<vmem>>, vector<1x1x32x134xf32>
    %33 = vector.shape_cast %32 : vector<1x1x32x134xf32> to vector<32x134xf32>
    %34 = vector.shape_cast %30 : vector<32x134xf32> to vector<1x1x32x134xf32>
    tpu.vector_store %arg9[%31, %c0_20, %c0_21, %c0_22], %34 {strides = array<i32>} : memref<1x7x32x134xf32, #tpu.memory_space<vmem>>, vector<1x1x32x134xf32>,
    %35 = arith.index_cast %c0_i32 : i32 to index
    %c1 = arith.constant 1 : index
    %c0_23 = arith.constant 0 : index
    %c0_24 = arith.constant 0 : index
    %36 = vector.load %arg3[%35, %c1, %c0_23, %c0_24] : memref<1x7x8x134xf32, #tpu.memory_space<vmem>>, vector<1x1x8x134xf32>
    %37 = vector.shape_cast %36 : vector<1x1x8x134xf32> to vector<8x134xf32>
    %cst_25 = arith.constant dense<0.000000e+00> : vector<32x134xf32>
    %38 = tpu.matmul %1, %37, %cst_25 {dimension_numbers = #tpu.dot_dimension_numbers<[1], [0], [0], [1], [0, 0, 1, 1], [], []>} : vector<32x8xf32>, vector<8x134xf32>, vector<32x134xf32> -> vector<32x134xf32>
    %39 = arith.addf %10, %38 : vector<32x134xf32>
    %40 = arith.index_cast %c0_i32 : i32 to index
    %c1_26 = arith.constant 1 : index
    %c0_27 = arith.constant 0 : index
    %c0_28 = arith.constant 0 : index
    %41 = vector.load %arg7[%40, %c1_26, %c0_27, %c0_28] : memref<1x7x32x134xf32, #tpu.memory_space<vmem>>, vector<1x1x32x134xf32>
    %42 = vector.shape_cast %41 : vector<1x1x32x134xf32> to vector<32x134xf32>
    %43 = vector.shape_cast %39 : vector<32x134xf32> to vector<1x1x32x134xf32>
    tpu.vector_store %arg7[%40, %c1_26, %c0_27, %c0_28], %43 {strides = array<i32>} : memref<1x7x32x134xf32, #tpu.memory_space<vmem>>, vector<1x1x32x134xf32>,
    %44 = arith.addf %5, %38 : vector<32x134xf32>
    %45 = arith.index_cast %c0_i32 : i32 to index
    %c1_29 = arith.constant 1 : index
    %c0_30 = arith.constant 0 : index
    %c0_31 = arith.constant 0 : index
    %46 = vector.load %arg8[%45, %c1_29, %c0_30, %c0_31] : memref<1x7x32x134xf32, #tpu.memory_space<vmem>>, vector<1x1x32x134xf32>
    %47 = vector.shape_cast %46 : vector<1x1x32x134xf32> to vector<32x134xf32>
    %48 = vector.shape_cast %44 : vector<32x134xf32> to vector<1x1x32x134xf32>
    tpu.vector_store %arg8[%45, %c1_29, %c0_30, %c0_31], %48 {strides = array<i32>} : memref<1x7x32x134xf32, #tpu.memory_space<vmem>>, vector<1x1x32x134xf32>,
    %49 = arith.addf %11, %38 : vector<32x134xf32>
    %50 = arith.index_cast %c0_i32 : i32 to index
    %c1_32 = arith.constant 1 : index
    %c0_33 = arith.constant 0 : index
    %c0_34 = arith.constant 0 : index
    %51 = vector.load %arg9[%50, %c1_32, %c0_33, %c0_34] : memref<1x7x32x134xf32, #tpu.memory_space<vmem>>, vector<1x1x32x134xf32>
    %52 = vector.shape_cast %51 : vector<1x1x32x134xf32> to vector<32x134xf32>
    %53 = vector.shape_cast %49 : vector<32x134xf32> to vector<1x1x32x134xf32>
    tpu.vector_store %arg9[%50, %c1_32, %c0_33, %c0_34], %53 {strides = array<i32>} : memref<1x7x32x134xf32, #tpu.memory_space<vmem>>, vector<1x1x32x134xf32>,
    %54 = arith.index_cast %c0_i32 : i32 to index
    %c2 = arith.constant 2 : index
    %c0_35 = arith.constant 0 : index
    %c0_36 = arith.constant 0 : index
    %55 = vector.load %arg3[%54, %c2, %c0_35, %c0_36] : memref<1x7x8x134xf32, #tpu.memory_space<vmem>>, vector<1x1x8x134xf32>
    %56 = vector.shape_cast %55 : vector<1x1x8x134xf32> to vector<8x134xf32>
    %cst_37 = arith.constant dense<0.000000e+00> : vector<32x134xf32>
    %57 = tpu.matmul %1, %56, %cst_37 {dimension_numbers = #tpu.dot_dimension_numbers<[1], [0], [0], [1], [0, 0, 1, 1], [], []>} : vector<32x8xf32>, vector<8x134xf32>, vector<32x134xf32> -> vector<32x134xf32>
    %58 = arith.addf %10, %57 : vector<32x134xf32>
    %59 = arith.index_cast %c0_i32 : i32 to index
    %c2_38 = arith.constant 2 : index
    %c0_39 = arith.constant 0 : index
    %c0_40 = arith.constant 0 : index
    %60 = vector.load %arg7[%59, %c2_38, %c0_39, %c0_40] : memref<1x7x32x134xf32, #tpu.memory_space<vmem>>, vector<1x1x32x134xf32>
    %61 = vector.shape_cast %60 : vector<1x1x32x134xf32> to vector<32x134xf32>
    %62 = vector.shape_cast %58 : vector<32x134xf32> to vector<1x1x32x134xf32>
    tpu.vector_store %arg7[%59, %c2_38, %c0_39, %c0_40], %62 {strides = array<i32>} : memref<1x7x32x134xf32, #tpu.memory_space<vmem>>, vector<1x1x32x134xf32>,
    %63 = arith.addf %5, %57 : vector<32x134xf32>
    %64 = arith.index_cast %c0_i32 : i32 to index
    %c2_41 = arith.constant 2 : index
    %c0_42 = arith.constant 0 : index
    %c0_43 = arith.constant 0 : index
    %65 = vector.load %arg8[%64, %c2_41, %c0_42, %c0_43] : memref<1x7x32x134xf32, #tpu.memory_space<vmem>>, vector<1x1x32x134xf32>
    %66 = vector.shape_cast %65 : vector<1x1x32x134xf32> to vector<32x134xf32>
    %67 = vector.shape_cast %63 : vector<32x134xf32> to vector<1x1x32x134xf32>
    tpu.vector_store %arg8[%64, %c2_41, %c0_42, %c0_43], %67 {strides = array<i32>} : memref<1x7x32x134xf32, #tpu.memory_space<vmem>>, vector<1x1x32x134xf32>,
    %68 = arith.addf %11, %57 : vector<32x134xf32>
    %69 = arith.index_cast %c0_i32 : i32 to index
    %c2_44 = arith.constant 2 : index
    %c0_45 = arith.constant 0 : index
    %c0_46 = arith.constant 0 : index
    %70 = vector.load %arg9[%69, %c2_44, %c0_45, %c0_46] : memref<1x7x32x134xf32, #tpu.memory_space<vmem>>, vector<1x1x32x134xf32>
    %71 = vector.shape_cast %70 : vector<1x1x32x134xf32> to vector<32x134xf32>
    %72 = vector.shape_cast %68 : vector<32x134xf32> to vector<1x1x32x134xf32>
    tpu.vector_store %arg9[%69, %c2_44, %c0_45, %c0_46], %72 {strides = array<i32>} : memref<1x7x32x134xf32, #tpu.memory_space<vmem>>, vector<1x1x32x134xf32>,
    %73 = arith.index_cast %c0_i32 : i32 to index
    %c3 = arith.constant 3 : index
    %c0_47 = arith.constant 0 : index
    %c0_48 = arith.constant 0 : index
    %74 = vector.load %arg3[%73, %c3, %c0_47, %c0_48] : memref<1x7x8x134xf32, #tpu.memory_space<vmem>>, vector<1x1x8x134xf32>
    %75 = vector.shape_cast %74 : vector<1x1x8x134xf32> to vector<8x134xf32>
    %cst_49 = arith.constant dense<0.000000e+00> : vector<32x134xf32>
    %76 = tpu.matmul %1, %75, %cst_49 {dimension_numbers = #tpu.dot_dimension_numbers<[1], [0], [0], [1], [0, 0, 1, 1], [], []>} : vector<32x8xf32>, vector<8x134xf32>, vector<32x134xf32> -> vector<32x134xf32>
    %77 = arith.addf %10, %76 : vector<32x134xf32>
    %78 = arith.index_cast %c0_i32 : i32 to index
    %c3_50 = arith.constant 3 : index
    %c0_51 = arith.constant 0 : index
    %c0_52 = arith.constant 0 : index
    %79 = vector.load %arg7[%78, %c3_50, %c0_51, %c0_52] : memref<1x7x32x134xf32, #tpu.memory_space<vmem>>, vector<1x1x32x134xf32>
    %80 = vector.shape_cast %79 : vector<1x1x32x134xf32> to vector<32x134xf32>
    %81 = vector.shape_cast %77 : vector<32x134xf32> to vector<1x1x32x134xf32>
    tpu.vector_store %arg7[%78, %c3_50, %c0_51, %c0_52], %81 {strides = array<i32>} : memref<1x7x32x134xf32, #tpu.memory_space<vmem>>, vector<1x1x32x134xf32>,
    %82 = arith.addf %5, %76 : vector<32x134xf32>
    %83 = arith.index_cast %c0_i32 : i32 to index
    %c3_53 = arith.constant 3 : index
    %c0_54 = arith.constant 0 : index
    %c0_55 = arith.constant 0 : index
    %84 = vector.load %arg8[%83, %c3_53, %c0_54, %c0_55] : memref<1x7x32x134xf32, #tpu.memory_space<vmem>>, vector<1x1x32x134xf32>
    %85 = vector.shape_cast %84 : vector<1x1x32x134xf32> to vector<32x134xf32>
    %86 = vector.shape_cast %82 : vector<32x134xf32> to vector<1x1x32x134xf32>
    tpu.vector_store %arg8[%83, %c3_53, %c0_54, %c0_55], %86 {strides = array<i32>} : memref<1x7x32x134xf32, #tpu.memory_space<vmem>>, vector<1x1x32x134xf32>,
    %87 = arith.addf %11, %76 : vector<32x134xf32>
    %88 = arith.index_cast %c0_i32 : i32 to index
    %c3_56 = arith.constant 3 : index
    %c0_57 = arith.constant 0 : index
    %c0_58 = arith.constant 0 : index
    %89 = vector.load %arg9[%88, %c3_56, %c0_57, %c0_58] : memref<1x7x32x134xf32, #tpu.memory_space<vmem>>, vector<1x1x32x134xf32>
    %90 = vector.shape_cast %89 : vector<1x1x32x134xf32> to vector<32x134xf32>
    %91 = vector.shape_cast %87 : vector<32x134xf32> to vector<1x1x32x134xf32>
    tpu.vector_store %arg9[%88, %c3_56, %c0_57, %c0_58], %91 {strides = array<i32>} : memref<1x7x32x134xf32, #tpu.memory_space<vmem>>, vector<1x1x32x134xf32>,
    %92 = arith.index_cast %c0_i32 : i32 to index
    %c4 = arith.constant 4 : index
    %c0_59 = arith.constant 0 : index
    %c0_60 = arith.constant 0 : index
    %93 = vector.load %arg3[%92, %c4, %c0_59, %c0_60] : memref<1x7x8x134xf32, #tpu.memory_space<vmem>>, vector<1x1x8x134xf32>
    %94 = vector.shape_cast %93 : vector<1x1x8x134xf32> to vector<8x134xf32>
    %cst_61 = arith.constant dense<0.000000e+00> : vector<32x134xf32>
    %95 = tpu.matmul %1, %94, %cst_61 {dimension_numbers = #tpu.dot_dimension_numbers<[1], [0], [0], [1], [0, 0, 1, 1], [], []>} : vector<32x8xf32>, vector<8x134xf32>, vector<32x134xf32> -> vector<32x134xf32>
    %96 = arith.addf %10, %95 : vector<32x134xf32>
    %97 = arith.index_cast %c0_i32 : i32 to index
    %c4_62 = arith.constant 4 : index
    %c0_63 = arith.constant 0 : index
    %c0_64 = arith.constant 0 : index
    %98 = vector.load %arg7[%97, %c4_62, %c0_63, %c0_64] : memref<1x7x32x134xf32, #tpu.memory_space<vmem>>, vector<1x1x32x134xf32>
    %99 = vector.shape_cast %98 : vector<1x1x32x134xf32> to vector<32x134xf32>
    %100 = vector.shape_cast %96 : vector<32x134xf32> to vector<1x1x32x134xf32>
    tpu.vector_store %arg7[%97, %c4_62, %c0_63, %c0_64], %100 {strides = array<i32>} : memref<1x7x32x134xf32, #tpu.memory_space<vmem>>, vector<1x1x32x134xf32>,
    %101 = arith.addf %5, %95 : vector<32x134xf32>
    %102 = arith.index_cast %c0_i32 : i32 to index
    %c4_65 = arith.constant 4 : index
    %c0_66 = arith.constant 0 : index
    %c0_67 = arith.constant 0 : index
    %103 = vector.load %arg8[%102, %c4_65, %c0_66, %c0_67] : memref<1x7x32x134xf32, #tpu.memory_space<vmem>>, vector<1x1x32x134xf32>
    %104 = vector.shape_cast %103 : vector<1x1x32x134xf32> to vector<32x134xf32>
    %105 = vector.shape_cast %101 : vector<32x134xf32> to vector<1x1x32x134xf32>
    tpu.vector_store %arg8[%102, %c4_65, %c0_66, %c0_67], %105 {strides = array<i32>} : memref<1x7x32x134xf32, #tpu.memory_space<vmem>>, vector<1x1x32x134xf32>,
    %106 = arith.addf %11, %95 : vector<32x134xf32>
    %107 = arith.index_cast %c0_i32 : i32 to index
    %c4_68 = arith.constant 4 : index
    %c0_69 = arith.constant 0 : index
    %c0_70 = arith.constant 0 : index
    %108 = vector.load %arg9[%107, %c4_68, %c0_69, %c0_70] : memref<1x7x32x134xf32, #tpu.memory_space<vmem>>, vector<1x1x32x134xf32>
    %109 = vector.shape_cast %108 : vector<1x1x32x134xf32> to vector<32x134xf32>
    %110 = vector.shape_cast %106 : vector<32x134xf32> to vector<1x1x32x134xf32>
    tpu.vector_store %arg9[%107, %c4_68, %c0_69, %c0_70], %110 {strides = array<i32>} : memref<1x7x32x134xf32, #tpu.memory_space<vmem>>, vector<1x1x32x134xf32>,
    %111 = arith.index_cast %c0_i32 : i32 to index
    %c5 = arith.constant 5 : index
    %c0_71 = arith.constant 0 : index
    %c0_72 = arith.constant 0 : index
    %112 = vector.load %arg3[%111, %c5, %c0_71, %c0_72] : memref<1x7x8x134xf32, #tpu.memory_space<vmem>>, vector<1x1x8x134xf32>
    %113 = vector.shape_cast %112 : vector<1x1x8x134xf32> to vector<8x134xf32>
    %cst_73 = arith.constant dense<0.000000e+00> : vector<32x134xf32>
    %114 = tpu.matmul %1, %113, %cst_73 {dimension_numbers = #tpu.dot_dimension_numbers<[1], [0], [0], [1], [0, 0, 1, 1], [], []>} : vector<32x8xf32>, vector<8x134xf32>, vector<32x134xf32> -> vector<32x134xf32>
    %115 = arith.addf %10, %114 : vector<32x134xf32>
    %116 = arith.index_cast %c0_i32 : i32 to index
    %c5_74 = arith.constant 5 : index
    %c0_75 = arith.constant 0 : index
    %c0_76 = arith.constant 0 : index
    %117 = vector.load %arg7[%116, %c5_74, %c0_75, %c0_76] : memref<1x7x32x134xf32, #tpu.memory_space<vmem>>, vector<1x1x32x134xf32>
    %118 = vector.shape_cast %117 : vector<1x1x32x134xf32> to vector<32x134xf32>
    %119 = vector.shape_cast %115 : vector<32x134xf32> to vector<1x1x32x134xf32>
    tpu.vector_store %arg7[%116, %c5_74, %c0_75, %c0_76], %119 {strides = array<i32>} : memref<1x7x32x134xf32, #tpu.memory_space<vmem>>, vector<1x1x32x134xf32>,
    %120 = arith.addf %5, %114 : vector<32x134xf32>
    %121 = arith.index_cast %c0_i32 : i32 to index
    %c5_77 = arith.constant 5 : index
    %c0_78 = arith.constant 0 : index
    %c0_79 = arith.constant 0 : index
    %122 = vector.load %arg8[%121, %c5_77, %c0_78, %c0_79] : memref<1x7x32x134xf32, #tpu.memory_space<vmem>>, vector<1x1x32x134xf32>
    %123 = vector.shape_cast %122 : vector<1x1x32x134xf32> to vector<32x134xf32>
    %124 = vector.shape_cast %120 : vector<32x134xf32> to vector<1x1x32x134xf32>
    tpu.vector_store %arg8[%121, %c5_77, %c0_78, %c0_79], %124 {strides = array<i32>} : memref<1x7x32x134xf32, #tpu.memory_space<vmem>>, vector<1x1x32x134xf32>,
    %125 = arith.addf %11, %114 : vector<32x134xf32>
    %126 = arith.index_cast %c0_i32 : i32 to index
    %c5_80 = arith.constant 5 : index
    %c0_81 = arith.constant 0 : index
    %c0_82 = arith.constant 0 : index
    %127 = vector.load %arg9[%126, %c5_80, %c0_81, %c0_82] : memref<1x7x32x134xf32, #tpu.memory_space<vmem>>, vector<1x1x32x134xf32>
    %128 = vector.shape_cast %127 : vector<1x1x32x134xf32> to vector<32x134xf32>
    %129 = vector.shape_cast %125 : vector<32x134xf32> to vector<1x1x32x134xf32>
    tpu.vector_store %arg9[%126, %c5_80, %c0_81, %c0_82], %129 {strides = array<i32>} : memref<1x7x32x134xf32, #tpu.memory_space<vmem>>, vector<1x1x32x134xf32>,
    %130 = arith.index_cast %c0_i32 : i32 to index
    %c6 = arith.constant 6 : index
    %c0_83 = arith.constant 0 : index
    %c0_84 = arith.constant 0 : index
    %131 = vector.load %arg3[%130, %c6, %c0_83, %c0_84] : memref<1x7x8x134xf32, #tpu.memory_space<vmem>>, vector<1x1x8x134xf32>
    %132 = vector.shape_cast %131 : vector<1x1x8x134xf32> to vector<8x134xf32>
    %cst_85 = arith.constant dense<0.000000e+00> : vector<32x134xf32>
    %133 = tpu.matmul %1, %132, %cst_85 {dimension_numbers = #tpu.dot_dimension_numbers<[1], [0], [0], [1], [0, 0, 1, 1], [], []>} : vector<32x8xf32>, vector<8x134xf32>, vector<32x134xf32> -> vector<32x134xf32>
    %134 = arith.addf %10, %133 : vector<32x134xf32>
    %135 = arith.index_cast %c0_i32 : i32 to index
    %c6_86 = arith.constant 6 : index
    %c0_87 = arith.constant 0 : index
    %c0_88 = arith.constant 0 : index
    %136 = vector.load %arg7[%135, %c6_86, %c0_87, %c0_88] : memref<1x7x32x134xf32, #tpu.memory_space<vmem>>, vector<1x1x32x134xf32>
    %137 = vector.shape_cast %136 : vector<1x1x32x134xf32> to vector<32x134xf32>
    %138 = vector.shape_cast %134 : vector<32x134xf32> to vector<1x1x32x134xf32>
    tpu.vector_store %arg7[%135, %c6_86, %c0_87, %c0_88], %138 {strides = array<i32>} : memref<1x7x32x134xf32, #tpu.memory_space<vmem>>, vector<1x1x32x134xf32>,
    %139 = arith.addf %5, %133 : vector<32x134xf32>
    %140 = arith.index_cast %c0_i32 : i32 to index
    %c6_89 = arith.constant 6 : index
    %c0_90 = arith.constant 0 : index
    %c0_91 = arith.constant 0 : index
    %141 = vector.load %arg8[%140, %c6_89, %c0_90, %c0_91] : memref<1x7x32x134xf32, #tpu.memory_space<vmem>>, vector<1x1x32x134xf32>
    %142 = vector.shape_cast %141 : vector<1x1x32x134xf32> to vector<32x134xf32>
    %143 = vector.shape_cast %139 : vector<32x134xf32> to vector<1x1x32x134xf32>
    tpu.vector_store %arg8[%140, %c6_89, %c0_90, %c0_91], %143 {strides = array<i32>} : memref<1x7x32x134xf32, #tpu.memory_space<vmem>>, vector<1x1x32x134xf32>,
    %144 = arith.addf %11, %133 : vector<32x134xf32>
    %145 = arith.index_cast %c0_i32 : i32 to index
    %c6_92 = arith.constant 6 : index
    %c0_93 = arith.constant 0 : index
    %c0_94 = arith.constant 0 : index
    %146 = vector.load %arg9[%145, %c6_92, %c0_93, %c0_94] : memref<1x7x32x134xf32, #tpu.memory_space<vmem>>, vector<1x1x32x134xf32>
    %147 = vector.shape_cast %146 : vector<1x1x32x134xf32> to vector<32x134xf32>
    %148 = vector.shape_cast %144 : vector<32x134xf32> to vector<1x1x32x134xf32>
    tpu.vector_store %arg9[%145, %c6_92, %c0_93, %c0_94], %148 {strides = array<i32>} : memref<1x7x32x134xf32, #tpu.memory_space<vmem>>, vector<1x1x32x134xf32>,
    %c1_i32 = arith.constant 1 : i32
    return
  }
  func.func @transform_0(%arg0: i32) -> (i32, i32, i32) {
    %c0_i32 = arith.constant 0 : i32
    %c0_i32_0 = arith.constant 0 : i32
    %c0_i32_1 = arith.constant 0 : i32
    return %arg0, %c0_i32, %c0_i32_0 : i32, i32, i32
  }
  func.func @transform_1(%arg0: i32) -> (i32, i32, i32) {
    %c0_i32 = arith.constant 0 : i32
    %c0_i32_0 = arith.constant 0 : i32
    %c0_i32_1 = arith.constant 0 : i32
    return %arg0, %c0_i32, %c0_i32_0 : i32, i32, i32
  }
  func.func @transform_2(%arg0: i32) -> (i32, i32, i32, i32) {
    %c0_i32 = arith.constant 0 : i32
    %c0_i32_0 = arith.constant 0 : i32
    %c0_i32_1 = arith.constant 0 : i32
    %c0_i32_2 = arith.constant 0 : i32
    return %arg0, %c0_i32, %c0_i32_0, %c0_i32_1 : i32, i32, i32, i32
  }
  func.func @transform_3(%arg0: i32) -> (i32, i32) {
    %c0_i32 = arith.constant 0 : i32
    %c0_i32_0 = arith.constant 0 : i32
    %c0_i32_1 = arith.constant 0 : i32
    return %c0_i32, %c0_i32_0 : i32, i32
  }
  func.func @transform_4(%arg0: i32) -> (i32, i32) {
    %c0_i32 = arith.constant 0 : i32
    %c0_i32_0 = arith.constant 0 : i32
    %c0_i32_1 = arith.constant 0 : i32
    return %c0_i32, %c0_i32_0 : i32, i32
  }
  func.func @transform_5(%arg0: i32) -> (i32, i32, i32, i32) {
    %c0_i32 = arith.constant 0 : i32
    %c0_i32_0 = arith.constant 0 : i32
    %c0_i32_1 = arith.constant 0 : i32
    %c0_i32_2 = arith.constant 0 : i32
    return %arg0, %c0_i32, %c0_i32_0, %c0_i32_1 : i32, i32, i32, i32
  }
  func.func @transform_6(%arg0: i32) -> (i32, i32, i32, i32) {
    %c0_i32 = arith.constant 0 : i32
    %c0_i32_0 = arith.constant 0 : i32
    %c0_i32_1 = arith.constant 0 : i32
    %c0_i32_2 = arith.constant 0 : i32
    return %arg0, %c0_i32, %c0_i32_0, %c0_i32_1 : i32, i32, i32, i32
  }
  func.func @transform_7(%arg0: i32) -> (i32, i32, i32, i32) {
    %c0_i32 = arith.constant 0 : i32
    %c0_i32_0 = arith.constant 0 : i32
    %c0_i32_1 = arith.constant 0 : i32
    %c0_i32_2 = arith.constant 0 : i32
    return %arg0, %c0_i32, %c0_i32_0, %c0_i32_1 : i32, i32, i32, i32
  }
  func.func @transform_8(%arg0: i32) -> (i32, i32, i32, i32) {
    %c0_i32 = arith.constant 0 : i32
    %c0_i32_0 = arith.constant 0 : i32
    %c0_i32_1 = arith.constant 0 : i32
    %c0_i32_2 = arith.constant 0 : i32
    return %arg0, %c0_i32, %c0_i32_0, %c0_i32_1 : i32, i32, i32, i32
  }
}

</mosaic_0001>

<bundles_post_ra>
// kernel: _embedding_forward.1
= control target key start
LH: loop header
LB: loop body
LE: loop exit
PB: predicated region body
PF: predicated region fallthrough
CT: control target
= control target key end

     0   :  { %s3264_s0 = inlined_call_operand.hbm [shape: f32[2,8,134], index: 0, kind: input, shape index: {}]   ;;  %s3265_s1 = inlined_call_operand.vmem [shape: f32[2,32,1], index: 1, kind: input, shape index: {}]   ;;  %s3266_s2 = inlined_call_operand.vmem [shape: f32[2,7,8,134], index: 2, kind: input, shape index: {}]   ;;  %s3267_s3 = inlined_call_operand.vmem [shape: f32[32,8], index: 3, kind: input, shape index: {}]   ;;  %s3268_s4 = inlined_call_operand.vmem [shape: f32[32,8], index: 4, kind: input, shape index: {}]   ;;  %s3269_s5 = inlined_call_operand.hbm [shape: f32[2,1,32,134], index: 5, kind: output, shape index: {0}]   ;;  %s3270_s6 = inlined_call_operand.hbm [shape: f32[2,7,32,134], index: 6, kind: output, shape index: {1}]   ;;  %s3271_s7 = inlined_call_operand.hbm [shape: f32[2,7,32,134], index: 7, kind: output, shape index: {2}]   ;;  %s3272_s8 = inlined_call_operand.hbm [shape: f32[2,7,32,134], index: 8, kind: output, shape index: {3}]  }
   0x1   :  { %3280 = sst [smem:[#allocation16_spill]] %s3264_s0 }
   0x2   :  { %3281 = sst [smem:[#allocation17_spill]] %s3265_s1 }
   0x3   :  { %3282 = sst [smem:[#allocation18_spill]] %s3266_s2 }
   0x4   :  { %14 = vsyncpa [#allocation3], 0 }
   0x5   :  { %16 = vsyncpa [#allocation3 + $0x1], 0 }
   0x6   :  { %17 = vsyncpa [#allocation4], 0 }
   0x7   :  { %19 = vsyncpa [#allocation4 + $0x1], 0 }
   0x8   :  { %20 = vsyncpa [#allocation7], 0 }
   0x9   :  { %22 = vsyncpa [#allocation7 + $0x1], 0 }
   0xa   :  { %23 = vsyncpa [#allocation10], 0 }
   0xb   :  { %25 = vsyncpa [#allocation10 + $0x1], 0  ;;  %s2336_s27 = smov 0   ;;  %s2338_s28 = smov 0  }
   0xc   :  { %s2340_s29 = smov 0   ;;  %s2342_s30 = smov 0  }
   0xd LB: > { %s2357_s9 = sadd.s32 4294967295, %s2280_s30   ;;  %s3273_s10 = sadd.s32 4294967294, %s2280_s30   ;;  %s2280_s30 = sphi %s2342_s30, %s3306_s30   ;;  %s2276_s29 = sphi %s2340_s29, %s3305_s29   ;;  %s2272_s28 = sphi %s2338_s28, %s3304_s28   ;;  %s2268_s27 = sphi %s2336_s27, %s3303_s27  }
   0xe   : > { %s2361_s11 = sadd.s32 1, %s2280_s30   ;;  %s38_s12 = sadd.s32 1, %s2276_s29 }
   0xf   : > { %s35_s13 = ssub.s32 %s2280_s30, %s2361_s11  ;;  %p45_p0 = scmp.ne.s32.totalorder %s2276_s29, %s2272_s28 }
  0x10   : > { %p36_p1 = scmp.eq.s32.totalorder %s35_s13, 0  ;;  %p46_p2 = scmp.eq.s32.totalorder %s2280_s30, 0 }
  0x11   : > { %p51_p3 = scmp.ne.s32.totalorder %s2272_s28, %s2268_s27  ;;  %p52_p4 = scmp.eq.s32.totalorder %s2357_s9, 0 }
  0x12   : > { %s2373_s14 = scalar_select %p36_p1, %s2276_s29, %s38_s12  }
  0x13   : > { %p2375_p5 = por %p46_p2, %p45_p0  ;;  %p2379_p6 = por %p52_p4, %p51_p3 }
  0x14   : > { %3283 = sst [smem:[#allocation15_spill]] %s2373_s14  ;;  %p169_p7 = scmp.eq.s32.totalorder %s2357_s9, 1 }
  0x15   : > { %s3285_s16 = scalar_select %p2379_p6, 1, 0 }
  0x16   : > { %p175_p8 = scmp.eq.s32.totalorder %s3273_s10, 1  ;;  %p2062_p10 = scmp.lt.s32.totalorder %s2280_s30, 2 }
  0x17   : > { %p2388_p11 = por %p169_p7, %p45_p0  ;;  %s279_s19 = sand.u32 1, %s2276_s29  }
  0x18   : > { %p2392_p12 = por %p175_p8, %p51_p3  ;;  %s2027_s20 = sshll.u32 %s2280_s30, 8 }
  0x19   : > { %s3286_s17 = scalar_select %p2388_p11, 1, 0 }
  0x1a   : > { %s3287_s18 = scalar_select %p2392_p12, 1, 0 }
  0x1b   : > { %s1822_s21 = sshll.u32 %s279_s19, 4  ;;  %s3288_s0 = sld [smem:[#allocation16_spill]] }
  0x1c   : > { %s283_s25 = scalar_lea.vmem [#allocation2], %s1822_s21  ;;  %p2405_p13 = pnand %p2062_p10, %p2375_p5 }
  0x1d   : > { %s291_s26 = sshll.u32 %s283_s25, 4  ;;  %s280_s13 = scalar_lea.sflag [#allocation3], %s279_s19  ;;  %s2409_s26 = int_to_ptr.vmem [resolvable:$true] %s291_s26 }
  0x1e   : > { %p2104_p3 = pneg %p2405_p13 }
  0x21   : > { %s2401_s24 = scalar_lea.hbm %s3288_s0, %s2027_s20  ;;  %s2107_s15 = scalar_lea.hbm %s3288_s0, 512 }
  0x22   : > { %s2102_s10 = scalar_lea.hbm %s2401_s24, 256  ;;  %p2108_p5 = scmp.lt.s32.totalorder %s2401_s24, %s3288_s0 }
  0x23   : > { %p2103_p2 = scmp.ne.s32.totalorder %s2401_s24, %s2102_s10  ;;  %p2109_p8 = scmp.lt.s32.totalorder %s2107_s15, %s2102_s10 }
  0x25   : > { %p2105_p4 = pnand %p2104_p3, %p2103_p2  ;;  %p2110_p10 = por %p2109_p8, %p2108_p5 }
  0x27   : > { %p2106_p7 = pneg %p2105_p4 }
  0x29   : > { %p2111_p9 = pnand %p2110_p10, %p2106_p7 }
  0x2b   : > { %2114 = shalt.err (!%p2111_p9)
}
  0x2c   : > { %s2115_s19 = scalar_lea.vmem %s2409_s26, 256  ;;  %s2282_s25 = smov [#allocation2]  }
  0x2d   : > { %p2116_p0 = scmp.ne.s32.totalorder %s2409_s26, %s2115_s19  ;;  %s2120_s14 = sshll.u32 %s2282_s25, 4  ;;  %s2121_s14 = int_to_ptr.vmem [resolvable:$false] %s2120_s14 }
  0x2e   : > { %s2122_s20 = scalar_lea.vmem %s2121_s14, 512  ;;  %p2123_p4 = scmp.lt.s32.totalorder %s2409_s26, %s2121_s14 }
  0x2f   : > { %p2118_p1 = pnand %p2116_p0, %p2104_p3  ;;  %p2124_p12 = scmp.lt.s32.totalorder %s2122_s20, %s2115_s19 }
  0x31   : > { %p2119_p2 = pneg %p2118_p1  ;;  %p2125_p11 = por %p2124_p12, %p2123_p4 }
  0x33   : > { %p2126_p6 = pnand %p2125_p11, %p2119_p2 }
  0x35   : > { %2129 = shalt.err (!%p2126_p6)
}
  0x36   : > { %2048 = dma.hbm_to_vmem [thread:$0]  (!%p2405_p13), %s2401_s24, 256, %s2409_s26, %s280_s13  }
  0x37   : > { %p3290_p9 = scmp.lt.s32.totalorder %s2280_s30, 3  ;;  %p3291_p7 = scmp.ge.s32.totalorder %s2280_s30, 1 }
  0x39   : > { %p313_p0 = pnand %p3291_p7, %p3290_p9 }
  0x3a   : > { %s2436_s10 = sand.u32 (!%p313_p0), 1, %s2272_s28   ;;  %p3292_p6 = scmp.ne.s32.totalorder (!%p313_p0), %s3285_s16, 0 }
  0x3b   : > { %316 = sbr.rel (%p313_p0) target bundleno = 434 (0x1b2), region = 40  ;;  %s1826_s14 = sshll.u32 (!%p313_p0), %s2436_s10, 4 }
  0x3c   : > { %s319_s21 = scalar_lea.sflag (!%p313_p0), [#allocation3], %s2436_s10  ;;  %s322_s15 = scalar_lea.vmem (!%p313_p0), [#allocation2], %s1826_s14 }
  0x40   : > { %2251 = dma.done.wait (%p3292_p6), %s319_s21, 256  }
  0x41   : > { %2253 = vsyncadd (%p3292_p6), %s319_s21, 4294967040  ;;  %p380_p11 = scmp.lt.s32.totalorder %s2357_s9, 1  ;;  %v2283_v0 = vmov 0.0   ;;  %v2284_v1 = vmov 0   ;;  %s3293_s2 = sld [smem:[#allocation18_spill]]  ;;  %v399_v2 = vld [vmem:[%s322_s15 + $0x8] sm:$0xff] }
  0x42   : > { %477 = vmatprep.mubr.f32.mxu0 %v2283_v0  ;;  %621 = vmatprep.mubr.f32.mxu1 %v2283_v0  ;;  %v398_v4 = vld [vmem:[%s322_s15] sm:$0xff]  ;;  %vm400_vm0 = vcmask 64512   ;;  %v391_v12 = vld [vmem:[%s3267_s3 + $0x8] sm:$0xff]  ;;  %s3294_s1 = sld [smem:[#allocation17_spill]]  ;;  %v393_v22 = vld [vmem:[%s3267_s3 + $0x18] sm:$0xff]  ;;  %vm535_vm1 = vcmask 48128  }
  0x43   : > { %s2448_s24 = scalar_select %p380_p11, %s2357_s9, 1  ;;  %2100 = vset.pattern.permute.xlu0 %v2284_v1  ;;  %2101 = vset.pattern.permute.xlu1 %v2284_v1  ;;  %v390_v6 = vld [vmem:[%s3267_s3] sm:$0xff]  ;;  %v2480_v13 = vld [vmem:[%s3268_s4 + $0x8] sm:$0xff]  ;;  %v392_v16 = vld [vmem:[%s3267_s3 + $0x10] sm:$0xff] }
  0x44   : > { %443 = vmatprep.subr.mxu0 %v399_v2  ;;  %v2464_v7 = vld [vmem:[%s3268_s4] sm:$0xff]  ;;  %v2500_v17 = vld [vmem:[%s3268_s4 + $0x10] sm:$0xff]  ;;  %v2513_v23 = vld [vmem:[%s3268_s4 + $0x18] sm:$0xff]  ;;  %s2029_s23 = sshll.u32 %s2357_s9, 10  ;;  %p3295_p13 = scmp.ne.s32.totalorder %s3286_s17, 0 }
  0x45   : > { %s2031_s26 = smul.u32 112, %s2448_s24  ;;  %444 = vmatpush1.msra.mxu0 %v398_v4  ;;  %s2028_s20 = sshll.u32 %s2448_s24, 5 }
  0x46   : > { %1831 = vmatmul.mubr.msk.f32.vlgmr.msra.gmra.mxu0 %vm400_vm0, %v390_v6  ;;  %s2723_s14 = scalar_lea.hbm %s3269_s5, %s2029_s23 }
  0x47   : > { %s2454_s16 = scalar_lea.vmem %s3293_s2, %s2031_s26  ;;  %483 = vmatprep.mubr.f32.mxu0 %v2283_v0  ;;  %s2030_s26 = smul.u32 448, %s2436_s10 }
  0x48   : > { %v544_v3 = vld [vmem:[%s2454_s16 + $0x8] sm:$0xff]  ;;  %v543_v5 = vld [vmem:[%s2454_s16] sm:$0xff]  ;;  %v1840_v8 = vld [vmem:[%s2454_s16 + $0x18] sm:$0xff]  ;;  %s384_s13 = scalar_lea.vmem %s3294_s1, %s2028_s20 }
  0x49   : > { %587 = vmatprep.subr.mxu1 %v544_v3  ;;  %v1870_v9 = vld [vmem:[%s2454_s16 + $0x28] sm:$0xff]  ;;  %v1839_v10 = vld [vmem:[%s2454_s16 + $0x10] sm:$0xff]  ;;  %v1869_v11 = vld [vmem:[%s2454_s16 + $0x20] sm:$0xff]  ;;  %727 = vmatprep.subr.mxu0 %v1840_v8  ;;  %s2616_s12 = scalar_lea.vmem [#allocation6], %s2030_s26  ;;  %s2636_s22 = scalar_lea.vmem [#allocation9], %s2030_s26 }
  0x4a   : > { %588 = vmatpush1.msra.mxu1 %v543_v5  ;;  %728 = vmatpush1.msra.mxu0 %v1839_v10  ;;  %v1900_v14 = vld [vmem:[%s2454_s16 + $0x38] sm:$0xff]  ;;  %v1930_v15 = vld [vmem:[%s2454_s16 + $0x48] sm:$0xff]  ;;  %v502_v18 = vld [vmem:[%s384_s13] sm:$0xff] }
  0x4b   : > { %1835 = vmatmul.mubr.msk.f32.vlgmr.msra.gmra.mxu1 %vm400_vm0, %v2464_v7  ;;  %870 = vmatprep.subr.mxu1 %v1870_v9  ;;  %v504_v19 = vld [vmem:[%s384_s13 + $0x10] sm:$0xff]  ;;  %v503_v20 = vld [vmem:[%s384_s13 + $0x8] sm:$0xff]  ;;  %v505_v21 = vld [vmem:[%s384_s13 + $0x18] sm:$0xff]  ;;  %s2619_s13 = scalar_lea.vmem [#allocation8], %s2030_s26 }
  0x4c   : > { %871 = vmatpush1.msra.mxu1 %v1869_v11  ;;  %627 = vmatprep.mubr.f32.mxu1 %v2283_v0  ;;  %v1899_v24 = vld [vmem:[%s2454_s16 + $0x30] sm:$0xff]  ;;  %v1929_v25 = vld [vmem:[%s2454_s16 + $0x40] sm:$0xff]  ;;  %v1960_v26 = vld [vmem:[%s2454_s16 + $0x58] sm:$0xff] }
  0x4d   : > { %1832 = vmatmul.mubr.msk.f32.gmra.mxu0 %vm400_vm0, %v391_v12  ;;  %1013 = vmatprep.subr.mxu0 %v1900_v14  ;;  %v1990_v27 = vld [vmem:[%s2454_s16 + $0x68] sm:$0xff]  ;;  %v1959_v28 = vld [vmem:[%s2454_s16 + $0x50] sm:$0xff]  ;;  %v1989_v29 = vld [vmem:[%s2454_s16 + $0x60] sm:$0xff]  ;;  %s1827_s16 = sshll.u32 %s2436_s10, 6 }
  0x4e   : > { %489 = vmatprep.mubr.f32.mxu0 %v2283_v0  ;;  %1156 = vmatprep.subr.mxu1 %v1930_v15  ;;  %s2606_s24 = scalar_lea.vmem [#allocation5], %s1827_s16  ;;  %s2285_s16 = smov [#allocation5]  }
  0x4f   : > { %1836 = vmatmul.mubr.msk.f32.gmra.mxu1 %vm400_vm0, %v2480_v13  ;;  %508 = vperm.xlu0 %2100, %v502_v18   ;;  %s1581_s19 = sshll.u32 %s2606_s24, 4  ;;  %s2134_s26 = sshll.u32 %s2285_s16, 4  ;;  %s2725_s19 = int_to_ptr.vmem [resolvable:$true] %s1581_s19  ;;  %s2135_s26 = int_to_ptr.vmem [resolvable:$false] %s2134_s26 }
  0x50   : > { %633 = vmatprep.mubr.f32.mxu1 %v2283_v0  ;;  %518 = vperm.xlu1 %2101, %v504_v19   ;;  %s2130_s15 = scalar_lea.vmem %s2725_s19, 1024  ;;  %s2136_s23 = scalar_lea.vmem %s2135_s26, 2048 }
  0x51   : > { %1833 = vmatmul.mubr.msk.f32.gmra.mxu0 %vm400_vm0, %v392_v16  ;;  %p2131_p12 = scmp.ne.s32.totalorder %s2725_s19, %s2130_s15  ;;  %p2137_p5 = scmp.lt.s32.totalorder %s2725_s19, %s2135_s26 }
  0x52   : > { %495 = vmatprep.mubr.f32.mxu0 %v2283_v0  ;;  %p2138_p8 = scmp.lt.s32.totalorder %s2136_s23, %s2130_s15 }
  0x53   : > { %1837 = vmatmul.mubr.msk.f32.gmra.mxu1 %vm400_vm0, %v2500_v17  ;;  %513 = vperm.xlu0 %2100, %v503_v20   ;;  %p2132_p1 = pnand %p2131_p12, %p3295_p13 }
  0x54   : > { %639 = vmatprep.mubr.f32.mxu1 %v2283_v0  ;;  %523 = vperm.xlu1 %2101, %v505_v21   ;;  %p2139_p10 = por %p2138_p8, %p2137_p5 }
  0x55   : > { %1834 = vmatmul.mubr.msk.f32.gmra.mxu0 %vm400_vm0, %v393_v22  ;;  %p2133_p3 = pneg %p2132_p1 }
  0x56   : > { %761 = vmatprep.mubr.f32.mxu0 %v2283_v0 }
  0x57   : > { %1838 = vmatmul.mubr.msk.f32.gmra.mxu1 %vm400_vm0, %v2513_v23  ;;  %p2140_p2 = pnand %p2139_p10, %p2133_p3 }
  0x58   : > { %904 = vmatprep.mubr.f32.mxu1 %v2283_v0 }
  0x59   : > { %1841 = vmatmul.mubr.msk.f32.vlgmr.msra.gmra.mxu0 %vm400_vm0, %v2464_v7 }
  0x5a   : > { %1014 = vmatpush1.msra.mxu0 %v1899_v24  ;;  %767 = vmatprep.mubr.f32.mxu0 %v2283_v0 }
  0x5b   : > { %1871 = vmatmul.mubr.msk.f32.vlgmr.msra.gmra.mxu1 %vm400_vm0, %v2464_v7  ;;  %1299 = vmatprep.subr.mxu0 %v1960_v26 }
  0x5c   : > { %1157 = vmatpush1.msra.mxu1 %v1929_v25  ;;  %910 = vmatprep.mubr.f32.mxu1 %v2283_v0 }
  0x5d   : > { %1442 = vmatprep.subr.mxu1 %v1990_v27  ;;  %1842 = vmatmul.mubr.msk.f32.gmra.mxu0 %vm400_vm0, %v2480_v13 }
  0x5e   : > { %773 = vmatprep.mubr.f32.mxu0 %v2283_v0 }
  0x5f   : > { %1872 = vmatmul.mubr.msk.f32.gmra.mxu1 %vm400_vm0, %v2480_v13 }
  0x60   : > { %916 = vmatprep.mubr.f32.mxu1 %v2283_v0 }
  0x61   : > { %1843 = vmatmul.mubr.msk.f32.gmra.mxu0 %vm400_vm0, %v2500_v17 }
  0x62   : > { %779 = vmatprep.mubr.f32.mxu0 %v2283_v0 }
  0x63   : > { %1873 = vmatmul.mubr.msk.f32.gmra.mxu1 %vm400_vm0, %v2500_v17 }
  0x64   : > { %922 = vmatprep.mubr.f32.mxu1 %v2283_v0 }
  0x65   : > { %1844 = vmatmul.mubr.msk.f32.gmra.mxu0 %vm400_vm0, %v2513_v23 }
  0x66   : > { %1047 = vmatprep.mubr.f32.mxu0 %v2283_v0 }
  0x67   : > { %1874 = vmatmul.mubr.msk.f32.gmra.mxu1 %vm400_vm0, %v2513_v23 }
  0x68   : > { %1190 = vmatprep.mubr.f32.mxu1 %v2283_v0 }
  0x69   : > { %1901 = vmatmul.mubr.msk.f32.vlgmr.msra.gmra.mxu0 %vm400_vm0, %v2464_v7 }
  0x6a   : > { %1300 = vmatpush1.msra.mxu0 %v1959_v28  ;;  %1053 = vmatprep.mubr.f32.mxu0 %v2283_v0 }
  0x6b   : > { %1931 = vmatmul.mubr.msk.f32.vlgmr.msra.gmra.mxu1 %vm400_vm0, %v2464_v7 }
  0x6c   : > { %1443 = vmatpush1.msra.mxu1 %v1989_v29  ;;  %1196 = vmatprep.mubr.f32.mxu1 %v2283_v0 }
  0x6d   : > { %1902 = vmatmul.mubr.msk.f32.gmra.mxu0 %vm400_vm0, %v2480_v13 }
  0x6e   : > { %1059 = vmatprep.mubr.f32.mxu0 %v2283_v0 }
  0x6f   : > { %1932 = vmatmul.mubr.msk.f32.gmra.mxu1 %vm400_vm0, %v2480_v13 }
  0x70   : > { %1202 = vmatprep.mubr.f32.mxu1 %v2283_v0 }
  0x71   : > { %1903 = vmatmul.mubr.msk.f32.gmra.mxu0 %vm400_vm0, %v2500_v17 }
  0x72   : > { %1065 = vmatprep.mubr.f32.mxu0 %v2283_v0 }
  0x73   : > { %1933 = vmatmul.mubr.msk.f32.gmra.mxu1 %vm400_vm0, %v2500_v17 }
  0x74   : > { %1208 = vmatprep.mubr.f32.mxu1 %v2283_v0 }
  0x75   : > { %1904 = vmatmul.mubr.msk.f32.gmra.mxu0 %vm400_vm0, %v2513_v23 }
  0x76   : > { %1333 = vmatprep.mubr.f32.mxu0 %v2283_v0 }
  0x77   : > { %1934 = vmatmul.mubr.msk.f32.gmra.mxu1 %vm400_vm0, %v2513_v23 }
  0x78   : > { %1476 = vmatprep.mubr.f32.mxu1 %v2283_v0 }
  0x79   : > { %1961 = vmatmul.mubr.msk.f32.vlgmr.msra.gmra.mxu0 %vm400_vm0, %v2464_v7 }
  0x7a   : > { %1339 = vmatprep.mubr.f32.mxu0 %v2283_v0 }
  0x7b   : > { %1991 = vmatmul.mubr.msk.f32.vlgmr.msra.gmra.mxu1 %vm400_vm0, %v2464_v7 }
  0x7c   : > { %1482 = vmatprep.mubr.f32.mxu1 %v2283_v0 }
  0x7d   : > { %1962 = vmatmul.mubr.msk.f32.gmra.mxu0 %vm400_vm0, %v2480_v13 }
  0x7e   : > { %1345 = vmatprep.mubr.f32.mxu0 %v2283_v0 }
  0x7f   : > { %1992 = vmatmul.mubr.msk.f32.gmra.mxu1 %vm400_vm0, %v2480_v13 }
  0x80   : > { %1488 = vmatprep.mubr.f32.mxu1 %v2283_v0 }
  0x81   : > { %1963 = vmatmul.mubr.msk.f32.gmra.mxu0 %vm400_vm0, %v2500_v17 }
  0x82   : > { %1351 = vmatprep.mubr.f32.mxu0 %v2283_v0 }
  0x83   : > { %1993 = vmatmul.mubr.msk.f32.gmra.mxu1 %vm400_vm0, %v2500_v17 }
  0x84   : > { %1494 = vmatprep.mubr.f32.mxu1 %v2283_v0 }
  0x85   : > { %1964 = vmatmul.mubr.msk.f32.gmra.mxu0 %vm400_vm0, %v2513_v23 }
  0x87   : > { %1994 = vmatmul.mubr.msk.f32.gmra.mxu1 %vm400_vm0, %v2513_v23 }
  0xca   : > { %v2596_v30 = vpop.permute.xlu0 %508 }
  0xcb   : > { %v2632_v43 = vpop.permute.xlu1 %518 }
  0xce   : > { %v2612_v36 = vpop.permute.xlu0 %513 }
  0xcf   : > { %v2684_v62 = vpop.permute.xlu1 %523 }
 0x106   : > { %v2600_v31 = vpop.f32.mrf.mxu0 }
 0x107   : > { %v2604_v33 = vadd.f32 %v2596_v30, %v2600_v31  ;;  %534 = vst [vmem:[%s2606_s24] sm:$0xff] %v2600_v31 }
 0x108   : > { %v2614_v37 = vpop.f32.mrf.mxu0 }
 0x109   : > { %v2625_v40 = vadd.f32 %v2596_v30, %v2614_v37  ;;  %536 = vst.msk [vmem:[%s2606_s24 + $0x8] sm:$0xff] %vm535_vm1, %v2614_v37 }
 0x10b   : > { %v623_v32 = vpop.f32.mrf.mxu1 }
 0x10c   : > { %v646_v34 = vadd.f32 %v623_v32, %v2596_v30  ;;  %v662_v35 = vadd.f32 %v623_v32, %v2600_v31  ;;  %v678_v39 = vadd.f32 %v623_v32, %v2604_v33 }
 0x10d   : > { %v625_v38 = vpop.f32.mrf.mxu1  ;;  %v2634_v44 = vpop.f32.mrf.mxu0 }
 0x10e   : > { %654 = vst [vmem:[%s2616_s12] sm:$0xff] %v646_v34  ;;  %670 = vst [vmem:[%s2619_s13] sm:$0xff] %v662_v35  ;;  %v647_v41 = vadd.f32 %v625_v38, %v2596_v30  ;;  %v663_v42 = vadd.f32 %v625_v38, %v2614_v37  ;;  %v679_v46 = vadd.f32 %v625_v38, %v2625_v40 }
 0x10f   : > { %v629_v45 = vpop.f32.mrf.mxu1  ;;  %686 = vst [vmem:[%s2636_s22] sm:$0xff] %v678_v39  ;;  %v2646_v47 = vadd.f32 %v2612_v36, %v2634_v44  ;;  %537 = vst [vmem:[%s2606_s24 + $0x10] sm:$0xff] %v2634_v44  ;;  %v2652_v50 = vpop.f32.mrf.mxu0 }
 0x110   : > { %655 = vst.msk [vmem:[%s2616_s12 + $0x8] sm:$0xff] %vm535_vm1, %v647_v41  ;;  %671 = vst.msk [vmem:[%s2619_s13 + $0x8] sm:$0xff] %vm535_vm1, %v663_v42  ;;  %v648_v48 = vadd.f32 %v629_v45, %v2612_v36  ;;  %v664_v49 = vadd.f32 %v629_v45, %v2634_v44  ;;  %v2661_v53 = vadd.f32 %v2612_v36, %v2652_v50 }
 0x111   : > { %v631_v51 = vpop.f32.mrf.mxu1  ;;  %687 = vst.msk [vmem:[%s2636_s22 + $0x8] sm:$0xff] %vm535_vm1, %v679_v46  ;;  %v680_v52 = vadd.f32 %v629_v45, %v2646_v47  ;;  %538 = vst.msk [vmem:[%s2606_s24 + $0x18] sm:$0xff] %vm535_vm1, %v2652_v50  ;;  %v2668_v56 = vpop.f32.mrf.mxu0 }
 0x112   : > { %656 = vst [vmem:[%s2616_s12 + $0x10] sm:$0xff] %v648_v48  ;;  %672 = vst [vmem:[%s2619_s13 + $0x10] sm:$0xff] %v664_v49  ;;  %v649_v54 = vadd.f32 %v631_v51, %v2612_v36  ;;  %v665_v55 = vadd.f32 %v631_v51, %v2652_v50  ;;  %v681_v58 = vadd.f32 %v631_v51, %v2661_v53 }
 0x113   : > { %v635_v57 = vpop.f32.mrf.mxu1  ;;  %688 = vst [vmem:[%s2636_s22 + $0x10] sm:$0xff] %v680_v52  ;;  %v2678_v59 = vadd.f32 %v2632_v43, %v2668_v56  ;;  %539 = vst [vmem:[%s2606_s24 + $0x20] sm:$0xff] %v2668_v56  ;;  %v2686_v63 = vpop.f32.mrf.mxu0 }
 0x114   : > { %657 = vst.msk [vmem:[%s2616_s12 + $0x18] sm:$0xff] %vm535_vm1, %v649_v54  ;;  %673 = vst.msk [vmem:[%s2619_s13 + $0x18] sm:$0xff] %vm535_vm1, %v665_v55  ;;  %v650_v60 = vadd.f32 %v635_v57, %v2632_v43  ;;  %v666_v61 = vadd.f32 %v635_v57, %v2668_v56  ;;  %v2697_v2 = vadd.f32 %v2632_v43, %v2686_v63 }
 0x115   : > { %v637_v0 = vpop.f32.mrf.mxu1  ;;  %689 = vst.msk [vmem:[%s2636_s22 + $0x18] sm:$0xff] %vm535_vm1, %v681_v58  ;;  %v682_v1 = vadd.f32 %v635_v57, %v2678_v59  ;;  %540 = vst.msk [vmem:[%s2606_s24 + $0x28] sm:$0xff] %vm535_vm1, %v2686_v63  ;;  %v2704_v5 = vpop.f32.mrf.mxu0 }
 0x116   : > { %658 = vst [vmem:[%s2616_s12 + $0x20] sm:$0xff] %v650_v60  ;;  %674 = vst [vmem:[%s2619_s13 + $0x20] sm:$0xff] %v666_v61  ;;  %v651_v3 = vadd.f32 %v637_v0, %v2632_v43  ;;  %v667_v4 = vadd.f32 %v637_v0, %v2686_v63  ;;  %v683_v7 = vadd.f32 %v637_v0, %v2697_v2 }
 0x117   : > { %v641_v6 = vpop.f32.mrf.mxu1  ;;  %690 = vst [vmem:[%s2636_s22 + $0x20] sm:$0xff] %v682_v1  ;;  %v2714_v8 = vadd.f32 %v2684_v62, %v2704_v5  ;;  %541 = vst [vmem:[%s2606_s24 + $0x30] sm:$0xff] %v2704_v5  ;;  %v2727_v11 = vpop.f32.mrf.mxu0 }
 0x118   : > { %659 = vst.msk [vmem:[%s2616_s12 + $0x28] sm:$0xff] %vm535_vm1, %v651_v3  ;;  %675 = vst.msk [vmem:[%s2619_s13 + $0x28] sm:$0xff] %vm535_vm1, %v667_v4  ;;  %v652_v9 = vadd.f32 %v641_v6, %v2684_v62  ;;  %v668_v10 = vadd.f32 %v641_v6, %v2704_v5  ;;  %v2736_v14 = vadd.f32 %v2684_v62, %v2727_v11 }
 0x119   : > { %v643_v12 = vpop.f32.mrf.mxu1  ;;  %691 = vst.msk [vmem:[%s2636_s22 + $0x28] sm:$0xff] %vm535_vm1, %v683_v7  ;;  %v684_v13 = vadd.f32 %v641_v6, %v2714_v8  ;;  %542 = vst.msk [vmem:[%s2606_s24 + $0x38] sm:$0xff] %vm535_vm1, %v2727_v11  ;;  %v763_v17 = vpop.f32.mrf.mxu0 }
 0x11a   : > { %660 = vst [vmem:[%s2616_s12 + $0x30] sm:$0xff] %v652_v9  ;;  %676 = vst [vmem:[%s2619_s13 + $0x30] sm:$0xff] %v668_v10  ;;  %v653_v15 = vadd.f32 %v643_v12, %v2684_v62  ;;  %v669_v16 = vadd.f32 %v643_v12, %v2727_v11 }
 0x11b   : > { %v906_v18 = vpop.f32.mrf.mxu1 }
 0x11c   : > { %2143 = shalt.err (!%p2140_p2)
}
 0x11d   : > { %s2144_s24 = scalar_lea.hbm %s2723_s14, 1024  ;;  %s2148_s16 = scalar_lea.hbm %s3269_s5, 2048 }
 0x11e   : > { %p2145_p4 = scmp.ne.s32.totalorder %s2723_s14, %s2144_s24  ;;  %p2149_p0 = scmp.lt.s32.totalorder %s2723_s14, %s3269_s5 }
 0x11f   : > { %p2150_p6 = scmp.lt.s32.totalorder %s2148_s16, %s2144_s24 }
 0x120   : > { %p2146_p9 = pnand %p2145_p4, %p3295_p13 }
 0x121   : > { %p2151_p11 = por %p2150_p6, %p2149_p0 }
 0x122   : > { %p2147_p7 = pneg %p2146_p9 }
 0x124   : > { %p2152_p12 = pnand %p2151_p11, %p2147_p7 }
 0x126   : > { %2155 = shalt.err (!%p2152_p12)
}
 0x127   : > { %s3276_s15 = smov 256   ;;  %s3278_s26 = smov 16   ;;  %692 = vst [vmem:[%s2636_s22 + $0x30] sm:$0xff] %v684_v13  ;;  %661 = vst.msk [vmem:[%s2616_s12 + $0x38] sm:$0xff] %vm535_vm1, %v653_v15  ;;  %v685_v19 = vadd.f32 %v643_v12, %v2736_v14  ;;  %v786_v20 = vadd.f32 %v763_v17, %v2596_v30  ;;  %v803_v21 = vadd.f32 %v763_v17, %v2600_v31  ;;  %v765_v26 = vpop.f32.mrf.mxu0  ;;  %v908_v27 = vpop.f32.mrf.mxu1 }
 0x128   : > { %s3296_s0 = scalar_lea.sflag [#allocation4], %s2436_s10  ;;  %677 = vst.msk [vmem:[%s2619_s13 + $0x38] sm:$0xff] %vm535_vm1, %v669_v16  ;;  %v820_v22 = vadd.f32 %v763_v17, %v2604_v33  ;;  %v929_v23 = vadd.f32 %v906_v18, %v2596_v30  ;;  %v946_v24 = vadd.f32 %v906_v18, %v2600_v31  ;;  %v963_v25 = vadd.f32 %v906_v18, %v2604_v33  ;;  %s1597_s21 = sshll.u32 %s2616_s12, 4  ;;  %s3134_s21 = int_to_ptr.vmem [resolvable:$true] %s1597_s21 }
 0x129   : > { %2037 = dma.vmem_to_hbm [thread:$0]  (%p3295_p13), %s2725_s19, 1024, %s2723_s14, %s3296_s0, %s3276_s15, %s3276_s15, %s3278_s26   ;;  %v787_v28 = vadd.f32 %v765_v26, %v2596_v30  ;;  %v804_v29 = vadd.f32 %v765_v26, %v2614_v37  ;;  %v821_v32 = vadd.f32 %v765_v26, %v2625_v40  ;;  %v930_v34 = vadd.f32 %v908_v27, %v2596_v30  ;;  %v769_v39 = vpop.f32.mrf.mxu0  ;;  %v912_v41 = vpop.f32.mrf.mxu1 }
 0x12a   : > { %693 = vst.msk [vmem:[%s2636_s22 + $0x38] sm:$0xff] %vm535_vm1, %v685_v19  ;;  %1845 = vst [vmem:[%s2616_s12 + $0x40] sm:$0xff] %v786_v20  ;;  %v947_v35 = vadd.f32 %v908_v27, %v2614_v37  ;;  %v964_v38 = vadd.f32 %v908_v27, %v2625_v40  ;;  %v788_v42 = vadd.f32 %v769_v39, %v2612_v36  ;;  %s1557_s19 = sand.u32 1, %s2357_s9   ;;  %s3085_s14 = smul.u32 7168, %s2357_s9 }
 0x12b   : > { %1853 = vst [vmem:[%s2619_s13 + $0x40] sm:$0xff] %v803_v21  ;;  %1861 = vst [vmem:[%s2636_s22 + $0x40] sm:$0xff] %v820_v22  ;;  %v805_v45 = vadd.f32 %v769_v39, %v2634_v44  ;;  %v822_v46 = vadd.f32 %v769_v39, %v2646_v47  ;;  %v931_v48 = vadd.f32 %v912_v41, %v2612_v36  ;;  %v771_v52 = vpop.f32.mrf.mxu0  ;;  %v914_v54 = vpop.f32.mrf.mxu1  ;;  %s1613_s23 = sshll.u32 %s2619_s13, 4  ;;  %s1629_s16 = sshll.u32 %s2636_s22, 4  ;;  %s3146_s23 = int_to_ptr.vmem [resolvable:$true] %s1613_s23  ;;  %s3162_s16 = int_to_ptr.vmem [resolvable:$true] %s1629_s16 }
 0x12c   : > { %1875 = vst [vmem:[%s2616_s12 + $0x80] sm:$0xff] %v929_v23  ;;  %1883 = vst [vmem:[%s2619_s13 + $0x80] sm:$0xff] %v946_v24  ;;  %v948_v49 = vadd.f32 %v912_v41, %v2634_v44  ;;  %v965_v51 = vadd.f32 %v912_v41, %v2646_v47  ;;  %v789_v55 = vadd.f32 %v771_v52, %v2612_v36  ;;  %s3123_s20 = scalar_lea.hbm %s3270_s6, %s3085_s14  ;;  %s3140_s25 = scalar_lea.hbm %s3271_s7, %s3085_s14 }
 0x12d   : > { %1891 = vst [vmem:[%s2636_s22 + $0x80] sm:$0xff] %v963_v25  ;;  %1846 = vst.msk [vmem:[%s2616_s12 + $0x48] sm:$0xff] %vm535_vm1, %v787_v28  ;;  %v806_v57 = vadd.f32 %v771_v52, %v2652_v50  ;;  %v823_v58 = vadd.f32 %v771_v52, %v2661_v53  ;;  %v932_v60 = vadd.f32 %v914_v54, %v2612_v36  ;;  %v775_v1 = vpop.f32.mrf.mxu0  ;;  %v918_v3 = vpop.f32.mrf.mxu1  ;;  %s3160_s15 = scalar_lea.hbm %s3272_s8, %s3085_s14  ;;  %s3170_s26 = scalar_lea.sflag [#allocation7], %s1557_s19 }
 0x12e   : > { %1854 = vst.msk [vmem:[%s2619_s13 + $0x48] sm:$0xff] %vm535_vm1, %v804_v29  ;;  %1862 = vst.msk [vmem:[%s2636_s22 + $0x48] sm:$0xff] %vm535_vm1, %v821_v32  ;;  %v949_v61 = vadd.f32 %v914_v54, %v2652_v50  ;;  %v966_v0 = vadd.f32 %v914_v54, %v2661_v53  ;;  %v790_v4 = vadd.f32 %v775_v1, %v2632_v43  ;;  %s2156_s1 = scalar_lea.vmem %s3134_s21, 7168 }
 0x12f   : > { %1876 = vst.msk [vmem:[%s2616_s12 + $0x88] sm:$0xff] %vm535_vm1, %v930_v34  ;;  %1884 = vst.msk [vmem:[%s2619_s13 + $0x88] sm:$0xff] %vm535_vm1, %v947_v35  ;;  %v807_v6 = vadd.f32 %v775_v1, %v2668_v56  ;;  %v824_v7 = vadd.f32 %v775_v1, %v2678_v59  ;;  %v933_v9 = vadd.f32 %v918_v3, %v2632_v43  ;;  %v777_v13 = vpop.f32.mrf.mxu0  ;;  %v920_v15 = vpop.f32.mrf.mxu1  ;;  %p2157_p1 = scmp.ne.s32.totalorder %s3134_s21, %s2156_s1 }
 0x130   : > { %1892 = vst.msk [vmem:[%s2636_s22 + $0x88] sm:$0xff] %vm535_vm1, %v964_v38  ;;  %1847 = vst [vmem:[%s2616_s12 + $0x50] sm:$0xff] %v788_v42  ;;  %v950_v10 = vadd.f32 %v918_v3, %v2668_v56  ;;  %v967_v12 = vadd.f32 %v918_v3, %v2678_v59  ;;  %v791_v16 = vadd.f32 %v777_v13, %v2632_v43 }
 0x131   : > { %1855 = vst [vmem:[%s2619_s13 + $0x50] sm:$0xff] %v805_v45  ;;  %1863 = vst [vmem:[%s2636_s22 + $0x50] sm:$0xff] %v822_v46  ;;  %v808_v17 = vadd.f32 %v777_v13, %v2686_v63  ;;  %v825_v18 = vadd.f32 %v777_v13, %v2697_v2  ;;  %v934_v19 = vadd.f32 %v920_v15, %v2632_v43  ;;  %v781_v22 = vpop.f32.mrf.mxu0  ;;  %v924_v23 = vpop.f32.mrf.mxu1  ;;  %p2158_p3 = pnand %p2157_p1, %p3295_p13 }
 0x132   : > { %1877 = vst [vmem:[%s2616_s12 + $0x90] sm:$0xff] %v931_v48  ;;  %1885 = vst [vmem:[%s2619_s13 + $0x90] sm:$0xff] %v948_v49  ;;  %v951_v20 = vadd.f32 %v920_v15, %v2686_v63  ;;  %v968_v21 = vadd.f32 %v920_v15, %v2697_v2  ;;  %v792_v24 = vadd.f32 %v781_v22, %v2684_v62 }
 0x133   : > { %1893 = vst [vmem:[%s2636_s22 + $0x90] sm:$0xff] %v965_v51  ;;  %1848 = vst.msk [vmem:[%s2616_s12 + $0x58] sm:$0xff] %vm535_vm1, %v789_v55  ;;  %v809_v25 = vadd.f32 %v781_v22, %v2704_v5  ;;  %v826_v26 = vadd.f32 %v781_v22, %v2714_v8  ;;  %v935_v27 = vadd.f32 %v924_v23, %v2684_v62  ;;  %v783_v32 = vpop.f32.mrf.mxu0  ;;  %v926_v34 = vpop.f32.mrf.mxu1  ;;  %p2159_p5 = pneg %p2158_p3 }
 0x134   : > { %1856 = vst.msk [vmem:[%s2619_s13 + $0x58] sm:$0xff] %vm535_vm1, %v806_v57  ;;  %1864 = vst.msk [vmem:[%s2636_s22 + $0x58] sm:$0xff] %vm535_vm1, %v823_v58  ;;  %v952_v28 = vadd.f32 %v924_v23, %v2704_v5  ;;  %v969_v29 = vadd.f32 %v924_v23, %v2714_v8  ;;  %v793_v35 = vadd.f32 %v783_v32, %v2684_v62 }
 0x135   : > { %1878 = vst.msk [vmem:[%s2616_s12 + $0x98] sm:$0xff] %vm535_vm1, %v932_v60  ;;  %1886 = vst.msk [vmem:[%s2619_s13 + $0x98] sm:$0xff] %vm535_vm1, %v949_v61  ;;  %v810_v38 = vadd.f32 %v783_v32, %v2727_v11  ;;  %v827_v39 = vadd.f32 %v783_v32, %v2736_v14  ;;  %v936_v41 = vadd.f32 %v926_v34, %v2684_v62  ;;  %v1049_v46 = vpop.f32.mrf.mxu0  ;;  %v1192_v48 = vpop.f32.mrf.mxu1 }
 0x136   : > { %1894 = vst.msk [vmem:[%s2636_s22 + $0x98] sm:$0xff] %vm535_vm1, %v966_v0  ;;  %1849 = vst [vmem:[%s2616_s12 + $0x60] sm:$0xff] %v790_v4  ;;  %v953_v42 = vadd.f32 %v926_v34, %v2727_v11  ;;  %v970_v45 = vadd.f32 %v926_v34, %v2736_v14  ;;  %v1072_v49 = vadd.f32 %v1049_v46, %v2596_v30 }
 0x137   : > { %1857 = vst [vmem:[%s2619_s13 + $0x60] sm:$0xff] %v807_v6  ;;  %1865 = vst [vmem:[%s2636_s22 + $0x60] sm:$0xff] %v824_v7  ;;  %v1089_v51 = vadd.f32 %v1049_v46, %v2600_v31  ;;  %v1106_v52 = vadd.f32 %v1049_v46, %v2604_v33  ;;  %v1215_v54 = vadd.f32 %v1192_v48, %v2596_v30  ;;  %v1051_v58 = vpop.f32.mrf.mxu0  ;;  %v1194_v60 = vpop.f32.mrf.mxu1 }
 0x138   : > { %1879 = vst [vmem:[%s2616_s12 + $0xa0] sm:$0xff] %v933_v9  ;;  %1887 = vst [vmem:[%s2619_s13 + $0xa0] sm:$0xff] %v950_v10  ;;  %v1232_v55 = vadd.f32 %v1192_v48, %v2600_v31  ;;  %v1249_v57 = vadd.f32 %v1192_v48, %v2604_v33  ;;  %v1073_v61 = vadd.f32 %v1051_v58, %v2596_v30 }
 0x139   : > { %1895 = vst [vmem:[%s2636_s22 + $0xa0] sm:$0xff] %v967_v12  ;;  %1850 = vst.msk [vmem:[%s2616_s12 + $0x68] sm:$0xff] %vm535_vm1, %v791_v16  ;;  %v1090_v0 = vadd.f32 %v1051_v58, %v2614_v37  ;;  %v1107_v1 = vadd.f32 %v1051_v58, %v2625_v40  ;;  %v1216_v3 = vadd.f32 %v1194_v60, %v2596_v30  ;;  %v1055_v7 = vpop.f32.mrf.mxu0  ;;  %v1198_v9 = vpop.f32.mrf.mxu1 }
 0x13a   : > { %1858 = vst.msk [vmem:[%s2619_s13 + $0x68] sm:$0xff] %vm535_vm1, %v808_v17  ;;  %1866 = vst.msk [vmem:[%s2636_s22 + $0x68] sm:$0xff] %vm535_vm1, %v825_v18  ;;  %v1233_v4 = vadd.f32 %v1194_v60, %v2614_v37  ;;  %v1250_v6 = vadd.f32 %v1194_v60, %v2625_v40  ;;  %v1074_v10 = vadd.f32 %v1055_v7, %v2612_v36 }
 0x13b   : > { %1880 = vst.msk [vmem:[%s2616_s12 + $0xa8] sm:$0xff] %vm535_vm1, %v934_v19  ;;  %1888 = vst.msk [vmem:[%s2619_s13 + $0xa8] sm:$0xff] %vm535_vm1, %v951_v20  ;;  %v1091_v12 = vadd.f32 %v1055_v7, %v2634_v44  ;;  %v1108_v13 = vadd.f32 %v1055_v7, %v2646_v47  ;;  %v1217_v15 = vadd.f32 %v1198_v9, %v2612_v36  ;;  %v1057_v18 = vpop.f32.mrf.mxu0  ;;  %v1200_v19 = vpop.f32.mrf.mxu1 }
 0x13c   : > { %1896 = vst.msk [vmem:[%s2636_s22 + $0xa8] sm:$0xff] %vm535_vm1, %v968_v21  ;;  %1851 = vst [vmem:[%s2616_s12 + $0x70] sm:$0xff] %v792_v24  ;;  %v1234_v16 = vadd.f32 %v1198_v9, %v2634_v44  ;;  %v1251_v17 = vadd.f32 %v1198_v9, %v2646_v47  ;;  %v1075_v20 = vadd.f32 %v1057_v18, %v2612_v36 }
 0x13d   : > { %1859 = vst [vmem:[%s2619_s13 + $0x70] sm:$0xff] %v809_v25  ;;  %1867 = vst [vmem:[%s2636_s22 + $0x70] sm:$0xff] %v826_v26  ;;  %v1092_v21 = vadd.f32 %v1057_v18, %v2652_v50  ;;  %v1109_v22 = vadd.f32 %v1057_v18, %v2661_v53  ;;  %v1218_v23 = vadd.f32 %v1200_v19, %v2612_v36  ;;  %v1061_v26 = vpop.f32.mrf.mxu0 }
 0x13e   : > { %1881 = vst [vmem:[%s2616_s12 + $0xb0] sm:$0xff] %v935_v27  ;;  %1889 = vst [vmem:[%s2619_s13 + $0xb0] sm:$0xff] %v952_v28  ;;  %v1235_v24 = vadd.f32 %v1200_v19, %v2652_v50  ;;  %v1252_v25 = vadd.f32 %v1200_v19, %v2661_v53  ;;  %v1204_v27 = vpop.f32.mrf.mxu1  ;;  %v1076_v28 = vadd.f32 %v1061_v26, %v2632_v43 }
 0x13f   : > { %1897 = vst [vmem:[%s2636_s22 + $0xb0] sm:$0xff] %v969_v29  ;;  %1852 = vst.msk [vmem:[%s2616_s12 + $0x78] sm:$0xff] %vm535_vm1, %v793_v35  ;;  %v1093_v29 = vadd.f32 %v1061_v26, %v2668_v56  ;;  %v1110_v32 = vadd.f32 %v1061_v26, %v2678_v59  ;;  %v1219_v34 = vadd.f32 %v1204_v27, %v2632_v43 }
 0x140   : > { %1860 = vst.msk [vmem:[%s2619_s13 + $0x78] sm:$0xff] %vm535_vm1, %v810_v38  ;;  %1868 = vst.msk [vmem:[%s2636_s22 + $0x78] sm:$0xff] %vm535_vm1, %v827_v39  ;;  %v1236_v35 = vadd.f32 %v1204_v27, %v2668_v56  ;;  %v1253_v38 = vadd.f32 %v1204_v27, %v2678_v59  ;;  %v1063_v39 = vpop.f32.mrf.mxu0 }
 0x141   : > { %1882 = vst.msk [vmem:[%s2616_s12 + $0xb8] sm:$0xff] %vm535_vm1, %v936_v41  ;;  %1890 = vst.msk [vmem:[%s2619_s13 + $0xb8] sm:$0xff] %vm535_vm1, %v953_v42  ;;  %v1206_v41 = vpop.f32.mrf.mxu1  ;;  %v1077_v42 = vadd.f32 %v1063_v39, %v2632_v43  ;;  %v1111_v46 = vadd.f32 %v1063_v39, %v2697_v2 }
 0x142   : > { %1898 = vst.msk [vmem:[%s2636_s22 + $0xb8] sm:$0xff] %vm535_vm1, %v970_v45  ;;  %1905 = vst [vmem:[%s2616_s12 + $0xc0] sm:$0xff] %v1072_v49  ;;  %v1094_v45 = vadd.f32 %v1063_v39, %v2686_v63  ;;  %v1220_v48 = vadd.f32 %v1206_v41, %v2632_v43  ;;  %v1237_v49 = vadd.f32 %v1206_v41, %v2686_v63 }
 0x143   : > { %1913 = vst [vmem:[%s2619_s13 + $0xc0] sm:$0xff] %v1089_v51  ;;  %1921 = vst [vmem:[%s2636_s22 + $0xc0] sm:$0xff] %v1106_v52  ;;  %v1254_v51 = vadd.f32 %v1206_v41, %v2697_v2  ;;  %v1067_v52 = vpop.f32.mrf.mxu0 }
 0x144   : > { %1935 = vst [vmem:[%s2616_s12 + $0x100] sm:$0xff] %v1215_v54  ;;  %1943 = vst [vmem:[%s2619_s13 + $0x100] sm:$0xff] %v1232_v55  ;;  %v1210_v54 = vpop.f32.mrf.mxu1  ;;  %v1078_v55 = vadd.f32 %v1067_v52, %v2684_v62  ;;  %v1112_v58 = vadd.f32 %v1067_v52, %v2714_v8 }
 0x145   : > { %1951 = vst [vmem:[%s2636_s22 + $0x100] sm:$0xff] %v1249_v57  ;;  %1906 = vst.msk [vmem:[%s2616_s12 + $0xc8] sm:$0xff] %vm535_vm1, %v1073_v61  ;;  %v1095_v57 = vadd.f32 %v1067_v52, %v2704_v5  ;;  %v1221_v60 = vadd.f32 %v1210_v54, %v2684_v62  ;;  %v1238_v61 = vadd.f32 %v1210_v54, %v2704_v5 }
 0x146   : > { %1914 = vst.msk [vmem:[%s2619_s13 + $0xc8] sm:$0xff] %vm535_vm1, %v1090_v0  ;;  %1922 = vst.msk [vmem:[%s2636_s22 + $0xc8] sm:$0xff] %vm535_vm1, %v1107_v1  ;;  %v1255_v0 = vadd.f32 %v1210_v54, %v2714_v8  ;;  %v1069_v1 = vpop.f32.mrf.mxu0 }
 0x147   : > { %1936 = vst.msk [vmem:[%s2616_s12 + $0x108] sm:$0xff] %vm535_vm1, %v1216_v3  ;;  %1944 = vst.msk [vmem:[%s2619_s13 + $0x108] sm:$0xff] %vm535_vm1, %v1233_v4  ;;  %v1212_v3 = vpop.f32.mrf.mxu1  ;;  %v1079_v4 = vadd.f32 %v1069_v1, %v2684_v62  ;;  %v1113_v7 = vadd.f32 %v1069_v1, %v2736_v14 }
 0x148   : > { %1952 = vst.msk [vmem:[%s2636_s22 + $0x108] sm:$0xff] %vm535_vm1, %v1250_v6  ;;  %1907 = vst [vmem:[%s2616_s12 + $0xd0] sm:$0xff] %v1074_v10  ;;  %v1096_v6 = vadd.f32 %v1069_v1, %v2727_v11  ;;  %v1222_v9 = vadd.f32 %v1212_v3, %v2684_v62  ;;  %v1239_v10 = vadd.f32 %v1212_v3, %v2727_v11 }
 0x149   : > { %1915 = vst [vmem:[%s2619_s13 + $0xd0] sm:$0xff] %v1091_v12  ;;  %1923 = vst [vmem:[%s2636_s22 + $0xd0] sm:$0xff] %v1108_v13  ;;  %v1256_v12 = vadd.f32 %v1212_v3, %v2736_v14  ;;  %v1335_v13 = vpop.f32.mrf.mxu0 }
 0x14a   : > { %1937 = vst [vmem:[%s2616_s12 + $0x110] sm:$0xff] %v1217_v15  ;;  %1945 = vst [vmem:[%s2619_s13 + $0x110] sm:$0xff] %v1234_v16  ;;  %v1478_v15 = vpop.f32.mrf.mxu1  ;;  %v1358_v16 = vadd.f32 %v1335_v13, %v2596_v30  ;;  %v1392_v18 = vadd.f32 %v1335_v13, %v2604_v33 }
 0x14b   : > { %1953 = vst [vmem:[%s2636_s22 + $0x110] sm:$0xff] %v1251_v17  ;;  %1908 = vst.msk [vmem:[%s2616_s12 + $0xd8] sm:$0xff] %vm535_vm1, %v1075_v20  ;;  %v1375_v17 = vadd.f32 %v1335_v13, %v2600_v31  ;;  %v1501_v19 = vadd.f32 %v1478_v15, %v2596_v30  ;;  %v1518_v20 = vadd.f32 %v1478_v15, %v2600_v31 }
 0x14c   : > { %1916 = vst.msk [vmem:[%s2619_s13 + $0xd8] sm:$0xff] %vm535_vm1, %v1092_v21  ;;  %1924 = vst.msk [vmem:[%s2636_s22 + $0xd8] sm:$0xff] %vm535_vm1, %v1109_v22  ;;  %v1535_v21 = vadd.f32 %v1478_v15, %v2604_v33  ;;  %v1337_v22 = vpop.f32.mrf.mxu0 }
 0x14d   : > { %1938 = vst.msk [vmem:[%s2616_s12 + $0x118] sm:$0xff] %vm535_vm1, %v1218_v23  ;;  %1946 = vst.msk [vmem:[%s2619_s13 + $0x118] sm:$0xff] %vm535_vm1, %v1235_v24  ;;  %v1480_v23 = vpop.f32.mrf.mxu1  ;;  %v1359_v24 = vadd.f32 %v1337_v22, %v2596_v30  ;;  %v1393_v26 = vadd.f32 %v1337_v22, %v2625_v40 }
 0x14e   : > { %1954 = vst.msk [vmem:[%s2636_s22 + $0x118] sm:$0xff] %vm535_vm1, %v1252_v25  ;;  %1909 = vst [vmem:[%s2616_s12 + $0xe0] sm:$0xff] %v1076_v28  ;;  %v1376_v25 = vadd.f32 %v1337_v22, %v2614_v37  ;;  %v1502_v31 = vadd.f32 %v1480_v23, %v2596_v30  ;;  %v1519_v33 = vadd.f32 %v1480_v23, %v2614_v37  ;;  %v1341_v28 = vpop.f32.mrf.mxu0 }
 0x14f   : > { %1917 = vst [vmem:[%s2619_s13 + $0xe0] sm:$0xff] %v1093_v29  ;;  %1925 = vst [vmem:[%s2636_s22 + $0xe0] sm:$0xff] %v1110_v32  ;;  %v1536_v27 = vadd.f32 %v1480_v23, %v2625_v40  ;;  %v1484_v29 = vpop.f32.mrf.mxu1  ;;  %v1360_v30 = vadd.f32 %v1341_v28, %v2612_v36  ;;  %v1377_v37 = vadd.f32 %v1341_v28, %v2634_v44 }
 0x150   : > { %1939 = vst [vmem:[%s2616_s12 + $0x120] sm:$0xff] %v1219_v34  ;;  %1947 = vst [vmem:[%s2619_s13 + $0x120] sm:$0xff] %v1236_v35  ;;  %v1394_v40 = vadd.f32 %v1341_v28, %v2646_v47  ;;  %v1503_v32 = vadd.f32 %v1484_v29, %v2612_v36  ;;  %v1520_v34 = vadd.f32 %v1484_v29, %v2634_v44 }
 0x151   : > { %1955 = vst [vmem:[%s2636_s22 + $0x120] sm:$0xff] %v1253_v38  ;;  %1910 = vst.msk [vmem:[%s2616_s12 + $0xe8] sm:$0xff] %vm535_vm1, %v1077_v42  ;;  %v1537_v35 = vadd.f32 %v1484_v29, %v2646_v47  ;;  %v1343_v38 = vpop.f32.mrf.mxu0  ;;  %v1486_v39 = vpop.f32.mrf.mxu1 }
 0x152   : > { %1918 = vst.msk [vmem:[%s2619_s13 + $0xe8] sm:$0xff] %vm535_vm1, %v1094_v45  ;;  %1926 = vst.msk [vmem:[%s2636_s22 + $0xe8] sm:$0xff] %vm535_vm1, %v1111_v46  ;;  %v1361_v41 = vadd.f32 %v1343_v38, %v2612_v36  ;;  %v1378_v42 = vadd.f32 %v1343_v38, %v2652_v50  ;;  %v1395_v45 = vadd.f32 %v1343_v38, %v2661_v53 }
 0x153   : > { %1940 = vst.msk [vmem:[%s2616_s12 + $0x128] sm:$0xff] %vm535_vm1, %v1220_v48  ;;  %1948 = vst.msk [vmem:[%s2619_s13 + $0x128] sm:$0xff] %vm535_vm1, %v1237_v49  ;;  %v1504_v44 = vadd.f32 %v1486_v39, %v2612_v36  ;;  %v1521_v47 = vadd.f32 %v1486_v39, %v2652_v50  ;;  %v1538_v46 = vadd.f32 %v1486_v39, %v2661_v53  ;;  %v1347_v48 = vpop.f32.mrf.mxu0  ;;  %v1490_v49 = vpop.f32.mrf.mxu1 }
 0x154   : > { %1956 = vst.msk [vmem:[%s2636_s22 + $0x128] sm:$0xff] %vm535_vm1, %v1254_v51  ;;  %1911 = vst [vmem:[%s2616_s12 + $0xf0] sm:$0xff] %v1078_v55  ;;  %v1362_v36 = vadd.f32 %v1347_v48, %v2632_v43  ;;  %v1379_v50 = vadd.f32 %v1347_v48, %v2668_v56  ;;  %v1396_v53 = vadd.f32 %v1347_v48, %v2678_v59 }
 0x155   : > { %1919 = vst [vmem:[%s2619_s13 + $0xf0] sm:$0xff] %v1095_v57  ;;  %1927 = vst [vmem:[%s2636_s22 + $0xf0] sm:$0xff] %v1112_v58  ;;  %v1505_v51 = vadd.f32 %v1490_v49, %v2632_v43  ;;  %v1522_v52 = vadd.f32 %v1490_v49, %v2668_v56  ;;  %v1539_v54 = vadd.f32 %v1490_v49, %v2678_v59  ;;  %v1349_v55 = vpop.f32.mrf.mxu0  ;;  %v1492_v57 = vpop.f32.mrf.mxu1 }
 0x156   : > { %1941 = vst [vmem:[%s2616_s12 + $0x130] sm:$0xff] %v1221_v60  ;;  %1949 = vst [vmem:[%s2619_s13 + $0x130] sm:$0xff] %v1238_v61  ;;  %v1363_v58 = vadd.f32 %v1349_v55, %v2632_v43  ;;  %v1380_v56 = vadd.f32 %v1349_v55, %v2686_v63  ;;  %v1397_v59 = vadd.f32 %v1349_v55, %v2697_v2 }
 0x157   : > { %1957 = vst [vmem:[%s2636_s22 + $0x130] sm:$0xff] %v1255_v0  ;;  %1912 = vst.msk [vmem:[%s2616_s12 + $0xf8] sm:$0xff] %vm535_vm1, %v1079_v4  ;;  %v1506_v60 = vadd.f32 %v1492_v57, %v2632_v43  ;;  %v1523_v61 = vadd.f32 %v1492_v57, %v2686_v63  ;;  %v1540_v0 = vadd.f32 %v1492_v57, %v2697_v2  ;;  %v1353_v1 = vpop.f32.mrf.mxu0  ;;  %v1496_v3 = vpop.f32.mrf.mxu1 }
 0x158   : > { %1920 = vst.msk [vmem:[%s2619_s13 + $0xf8] sm:$0xff] %vm535_vm1, %v1096_v6  ;;  %1928 = vst.msk [vmem:[%s2636_s22 + $0xf8] sm:$0xff] %vm535_vm1, %v1113_v7  ;;  %v1364_v43 = vadd.f32 %v1353_v1, %v2684_v62  ;;  %v1381_v63 = vadd.f32 %v1353_v1, %v2704_v5  ;;  %v1398_v2 = vadd.f32 %v1353_v1, %v2714_v8 }
 0x159   : > { %1942 = vst.msk [vmem:[%s2616_s12 + $0x138] sm:$0xff] %vm535_vm1, %v1222_v9  ;;  %1950 = vst.msk [vmem:[%s2619_s13 + $0x138] sm:$0xff] %vm535_vm1, %v1239_v10  ;;  %v1507_v4 = vadd.f32 %v1496_v3, %v2684_v62  ;;  %v1524_v6 = vadd.f32 %v1496_v3, %v2704_v5  ;;  %v1541_v7 = vadd.f32 %v1496_v3, %v2714_v8  ;;  %v1355_v9 = vpop.f32.mrf.mxu0  ;;  %v1498_v10 = vpop.f32.mrf.mxu1 }
 0x15a   : > { %1958 = vst.msk [vmem:[%s2636_s22 + $0x138] sm:$0xff] %vm535_vm1, %v1256_v12  ;;  %1965 = vst [vmem:[%s2616_s12 + $0x140] sm:$0xff] %v1358_v16  ;;  %v1365_v5 = vadd.f32 %v1355_v9, %v2684_v62  ;;  %v1382_v8 = vadd.f32 %v1355_v9, %v2727_v11  ;;  %v1399_v12 = vadd.f32 %v1355_v9, %v2736_v14 }
 0x15b   : > { %1973 = vst [vmem:[%s2619_s13 + $0x140] sm:$0xff] %v1375_v17  ;;  %1981 = vst [vmem:[%s2636_s22 + $0x140] sm:$0xff] %v1392_v18  ;;  %v1508_v13 = vadd.f32 %v1498_v10, %v2684_v62  ;;  %v1525_v15 = vadd.f32 %v1498_v10, %v2727_v11  ;;  %v1542_v16 = vadd.f32 %v1498_v10, %v2736_v14 }
 0x15c   : > { %1995 = vst [vmem:[%s2616_s12 + $0x180] sm:$0xff] %v1501_v19  ;;  %2003 = vst [vmem:[%s2619_s13 + $0x180] sm:$0xff] %v1518_v20 }
 0x15d   : > { %2011 = vst [vmem:[%s2636_s22 + $0x180] sm:$0xff] %v1535_v21  ;;  %1966 = vst.msk [vmem:[%s2616_s12 + $0x148] sm:$0xff] %vm535_vm1, %v1359_v24 }
 0x15e   : > { %1974 = vst.msk [vmem:[%s2619_s13 + $0x148] sm:$0xff] %vm535_vm1, %v1376_v25  ;;  %1982 = vst.msk [vmem:[%s2636_s22 + $0x148] sm:$0xff] %vm535_vm1, %v1393_v26 }
 0x15f   : > { %1996 = vst.msk [vmem:[%s2616_s12 + $0x188] sm:$0xff] %vm535_vm1, %v1502_v31  ;;  %2004 = vst.msk [vmem:[%s2619_s13 + $0x188] sm:$0xff] %vm535_vm1, %v1519_v33 }
 0x160   : > { %2012 = vst.msk [vmem:[%s2636_s22 + $0x188] sm:$0xff] %vm535_vm1, %v1536_v27  ;;  %1967 = vst [vmem:[%s2616_s12 + $0x150] sm:$0xff] %v1360_v30 }
 0x161   : > { %1975 = vst [vmem:[%s2619_s13 + $0x150] sm:$0xff] %v1377_v37  ;;  %1983 = vst [vmem:[%s2636_s22 + $0x150] sm:$0xff] %v1394_v40 }
 0x162   : > { %1997 = vst [vmem:[%s2616_s12 + $0x190] sm:$0xff] %v1503_v32  ;;  %2005 = vst [vmem:[%s2619_s13 + $0x190] sm:$0xff] %v1520_v34 }
 0x163   : > { %2013 = vst [vmem:[%s2636_s22 + $0x190] sm:$0xff] %v1537_v35  ;;  %1968 = vst.msk [vmem:[%s2616_s12 + $0x158] sm:$0xff] %vm535_vm1, %v1361_v41 }
 0x164   : > { %1976 = vst.msk [vmem:[%s2619_s13 + $0x158] sm:$0xff] %vm535_vm1, %v1378_v42  ;;  %1984 = vst.msk [vmem:[%s2636_s22 + $0x158] sm:$0xff] %vm535_vm1, %v1395_v45 }
 0x165   : > { %1998 = vst.msk [vmem:[%s2616_s12 + $0x198] sm:$0xff] %vm535_vm1, %v1504_v44  ;;  %2006 = vst.msk [vmem:[%s2619_s13 + $0x198] sm:$0xff] %vm535_vm1, %v1521_v47 }
 0x166   : > { %2014 = vst.msk [vmem:[%s2636_s22 + $0x198] sm:$0xff] %vm535_vm1, %v1538_v46  ;;  %1969 = vst [vmem:[%s2616_s12 + $0x160] sm:$0xff] %v1362_v36 }
 0x167   : > { %1977 = vst [vmem:[%s2619_s13 + $0x160] sm:$0xff] %v1379_v50  ;;  %1985 = vst [vmem:[%s2636_s22 + $0x160] sm:$0xff] %v1396_v53 }
 0x168   : > { %1999 = vst [vmem:[%s2616_s12 + $0x1a0] sm:$0xff] %v1505_v51  ;;  %2007 = vst [vmem:[%s2619_s13 + $0x1a0] sm:$0xff] %v1522_v52 }
 0x169   : > { %2015 = vst [vmem:[%s2636_s22 + $0x1a0] sm:$0xff] %v1539_v54  ;;  %1970 = vst.msk [vmem:[%s2616_s12 + $0x168] sm:$0xff] %vm535_vm1, %v1363_v58 }
 0x16a   : > { %1978 = vst.msk [vmem:[%s2619_s13 + $0x168] sm:$0xff] %vm535_vm1, %v1380_v56  ;;  %1986 = vst.msk [vmem:[%s2636_s22 + $0x168] sm:$0xff] %vm535_vm1, %v1397_v59 }
 0x16b   : > { %2000 = vst.msk [vmem:[%s2616_s12 + $0x1a8] sm:$0xff] %vm535_vm1, %v1506_v60  ;;  %2008 = vst.msk [vmem:[%s2619_s13 + $0x1a8] sm:$0xff] %vm535_vm1, %v1523_v61 }
 0x16c   : > { %2016 = vst.msk [vmem:[%s2636_s22 + $0x1a8] sm:$0xff] %vm535_vm1, %v1540_v0  ;;  %1971 = vst [vmem:[%s2616_s12 + $0x170] sm:$0xff] %v1364_v43 }
 0x16d   : > { %1979 = vst [vmem:[%s2619_s13 + $0x170] sm:$0xff] %v1381_v63  ;;  %1987 = vst [vmem:[%s2636_s22 + $0x170] sm:$0xff] %v1398_v2 }
 0x16e   : > { %2001 = vst [vmem:[%s2616_s12 + $0x1b0] sm:$0xff] %v1507_v4  ;;  %2009 = vst [vmem:[%s2619_s13 + $0x1b0] sm:$0xff] %v1524_v6 }
 0x16f   : > { %2017 = vst [vmem:[%s2636_s22 + $0x1b0] sm:$0xff] %v1541_v7  ;;  %1972 = vst.msk [vmem:[%s2616_s12 + $0x178] sm:$0xff] %vm535_vm1, %v1365_v5 }
 0x170   : > { %1980 = vst.msk [vmem:[%s2619_s13 + $0x178] sm:$0xff] %vm535_vm1, %v1382_v8  ;;  %1988 = vst.msk [vmem:[%s2636_s22 + $0x178] sm:$0xff] %vm535_vm1, %v1399_v12 }
 0x171   : > { %2002 = vst.msk [vmem:[%s2616_s12 + $0x1b8] sm:$0xff] %vm535_vm1, %v1508_v13  ;;  %2010 = vst.msk [vmem:[%s2619_s13 + $0x1b8] sm:$0xff] %vm535_vm1, %v1525_v15  ;;  %s2288_s12 = smov [#allocation6]  }
 0x172   : > { %2018 = vst.msk [vmem:[%s2636_s22 + $0x1b8] sm:$0xff] %vm535_vm1, %v1542_v16  ;;  %s2160_s2 = sshll.u32 %s2288_s12, 4  ;;  %s2161_s2 = int_to_ptr.vmem [resolvable:$false] %s2160_s2 }
 0x173   : > { %s2162_s0 = scalar_lea.vmem %s2161_s2, 14336  ;;  %p2163_p8 = scmp.lt.s32.totalorder %s3134_s21, %s2161_s2 }
 0x174   : > { %p2164_p10 = scmp.lt.s32.totalorder %s2162_s0, %s2156_s1 }
 0x176   : > { %p2165_p2 = por %p2164_p10, %p2163_p8 }
 0x178   : > { %p2166_p4 = pnand %p2165_p2, %p2159_p5 }
 0x17a   : > { %2169 = shalt.err (!%p2166_p4)
}
 0x17b   : > { %s2170_s9 = scalar_lea.hbm %s3123_s20, 7168  ;;  %s2174_s19 = scalar_lea.hbm %s3270_s6, 14336 }
 0x17c   : > { %p2171_p9 = scmp.ne.s32.totalorder %s3123_s20, %s2170_s9  ;;  %p2175_p6 = scmp.lt.s32.totalorder %s3123_s20, %s3270_s6 }
 0x17d   : > { %p2176_p11 = scmp.lt.s32.totalorder %s2174_s19, %s2170_s9 }
 0x17e   : > { %p2172_p7 = pnand %p2171_p9, %p3295_p13 }
 0x17f   : > { %p2177_p12 = por %p2176_p11, %p2175_p6 }
 0x180   : > { %p2173_p0 = pneg %p2172_p7 }
 0x182   : > { %p2178_p1 = pnand %p2177_p12, %p2173_p0 }
 0x184   : > { %2181 = shalt.err (!%p2178_p1)
}
 0x185   : > { %s3297_s1 = smov 16   ;;  %s3298_s2 = smov 256  }
 0x186   : > { %2038 = dma.vmem_to_hbm [thread:$0]  (%p3295_p13), %s3134_s21, 7168, %s3123_s20, %s3170_s26, %s3298_s2, %s3298_s2, %s3297_s1  }
 0x187   : > { %s2182_s12 = scalar_lea.vmem %s3146_s23, 7168  ;;  %s2289_s0 = smov [#allocation8]  }
 0x188   : > { %p2183_p3 = scmp.ne.s32.totalorder %s3146_s23, %s2182_s12  ;;  %s2186_s9 = sshll.u32 %s2289_s0, 4  ;;  %s2187_s9 = int_to_ptr.vmem [resolvable:$false] %s2186_s9 }
 0x189   : > { %s2188_s13 = scalar_lea.vmem %s2187_s9, 14336  ;;  %p2189_p10 = scmp.lt.s32.totalorder %s3146_s23, %s2187_s9 }
 0x18a   : > { %p2184_p5 = pnand %p2183_p3, %p3295_p13  ;;  %p2190_p2 = scmp.lt.s32.totalorder %s2188_s13, %s2182_s12 }
 0x18c   : > { %p2185_p8 = pneg %p2184_p5  ;;  %p2191_p4 = por %p2190_p2, %p2189_p10 }
 0x18e   : > { %p2192_p9 = pnand %p2191_p4, %p2185_p8 }
 0x190   : > { %2195 = shalt.err (!%p2192_p9)
}
 0x191   : > { %s2196_s22 = scalar_lea.hbm %s3140_s25, 7168  ;;  %s2200_s19 = scalar_lea.hbm %s3271_s7, 14336 }
 0x192   : > { %p2197_p7 = scmp.ne.s32.totalorder %s3140_s25, %s2196_s22  ;;  %p2201_p11 = scmp.lt.s32.totalorder %s3140_s25, %s3271_s7 }
 0x193   : > { %p2202_p12 = scmp.lt.s32.totalorder %s2200_s19, %s2196_s22 }
 0x194   : > { %p2198_p0 = pnand %p2197_p7, %p3295_p13 }
 0x195   : > { %p2203_p1 = por %p2202_p12, %p2201_p11 }
 0x196   : > { %p2199_p6 = pneg %p2198_p0 }
 0x198   : > { %p2204_p3 = pnand %p2203_p1, %p2199_p6 }
 0x19a   : > { %2207 = shalt.err (!%p2204_p3)
}
 0x19b   : > { %2039 = dma.vmem_to_hbm [thread:$0]  (%p3295_p13), %s3146_s23, 7168, %s3140_s25, %s3170_s26, %s3298_s2, %s3298_s2, %s3297_s1  }
 0x19c   : > { %s1568_s12 = scalar_lea.sflag [#allocation10], %s2436_s10  ;;  %s2208_s0 = scalar_lea.vmem %s3162_s16, 7168 }
 0x19d   : > { %p2209_p5 = scmp.ne.s32.totalorder %s3162_s16, %s2208_s0  ;;  %s2290_s9 = smov [#allocation9]  }
 0x19e   : > { %s2212_s13 = sshll.u32 %s2290_s9, 4  ;;  %s2213_s13 = int_to_ptr.vmem [resolvable:$false] %s2212_s13 }
 0x19f   : > { %p2210_p8 = pnand %p2209_p5, %p3295_p13  ;;  %s2214_s22 = scalar_lea.vmem %s2213_s13, 14336 }
 0x1a0   : > { %p2215_p2 = scmp.lt.s32.totalorder %s3162_s16, %s2213_s13  ;;  %p2216_p4 = scmp.lt.s32.totalorder %s2214_s22, %s2208_s0 }
 0x1a1   : > { %p2211_p10 = pneg %p2210_p8 }
 0x1a2   : > { %p2217_p9 = por %p2216_p4, %p2215_p2 }
 0x1a4   : > { %p2218_p7 = pnand %p2217_p9, %p2211_p10 }
 0x1a6   : > { %2221 = shalt.err (!%p2218_p7)
}
 0x1a7   : > { %s2222_s26 = scalar_lea.hbm %s3160_s15, 7168  ;;  %s2226_s25 = scalar_lea.hbm %s3272_s8, 14336 }
 0x1a8   : > { %p2223_p0 = scmp.ne.s32.totalorder %s3160_s15, %s2222_s26  ;;  %p2227_p12 = scmp.lt.s32.totalorder %s3160_s15, %s3272_s8 }
 0x1a9   : > { %p2228_p1 = scmp.lt.s32.totalorder %s2226_s25, %s2222_s26 }
 0x1aa   : > { %p2224_p6 = pnand %p2223_p0, %p3295_p13 }
 0x1ab   : > { %p2229_p3 = por %p2228_p1, %p2227_p12 }
 0x1ac   : > { %p2225_p11 = pneg %p2224_p6 }
 0x1ae   : > { %p2230_p5 = pnand %p2229_p3, %p2225_p11 }
 0x1b0   : > { %2233 = shalt.err (!%p2230_p5)
}
 0x1b1   : > { %2040 = dma.vmem_to_hbm [thread:$0]  (%p3295_p13), %s3162_s16, 7168, %s3160_s15, %s1568_s12, %s3298_s2, %s3298_s2, %s3297_s1  }
 0x1b2 PF: > { %s1644_s19 = sand.u32 1, %s2268_s27   ;;  %p3299_p8 = scmp.ne.s32.totalorder %s3287_s18, 0 }
 0x1b3   : > { %p3300_p10 = scmp.ge.s32.totalorder %s2280_s30, 2  ;;  %s1645_s14 = scalar_lea.sflag [#allocation4], %s1644_s19 }
 0x1b5   : > { %p2050_p2 = pnand %p3300_p10, %p3299_p8 }
 0x1b7   : > { %p2051_p4 = pneg %p2050_p2 }
 0x1b9   : > { %2255 = dma.done.wait (%p2051_p4), %s1645_s14, 1024  }
 0x1ba   : > { %2257 = vsyncadd (%p2051_p4), %s1645_s14, 4294966272  ;;  %s3301_s17 = sadd.s32 4294967294, %s2280_s30  }
 0x1bb   : > { %s1653_s24 = sand.u32 1, %s3301_s17  }
 0x1bc   : > { %s1654_s0 = scalar_lea.sflag [#allocation7], %s1653_s24 }
 0x1bd   : > { %2259 = dma.done.wait (%p2051_p4), %s1654_s0, 14336  }
 0x1be   : > { %2261 = vsyncadd (%p2051_p4), %s1654_s0, 4294952960  ;;  %s1672_s9 = scalar_lea.sflag [#allocation10], %s1644_s19 }
 0x1bf   : > { %2263 = dma.done.wait (%p2051_p4), %s1672_s9, 7168  }
 0x1c0   : > { %2265 = vsyncadd (%p2051_p4), %s1672_s9, 4294960128  ;;  %s3302_s15 = sld [smem:[#allocation15_spill]]  ;;  %p28_p13 = scmp.ge.s32.totalorder %s2361_s11, 4  }
 0x1c1   : > { %s3303_s27 = smov %s2272_s28  ;;  %s3304_s28 = smov %s2276_s29 }
 0x1c2   : > { %s3306_s30 = smov %s2361_s11  ;;  %30 = sbr.rel (!%p28_p13) target bundleno = 13 (0xd), region = 164 }
 0x1c6   : > { %s3305_s29 = smov %s3302_s15 }
 0x1c7   :  { %1677 = vsyncpa [#allocation3], 1 }
 0x1c8   :  { %1679 = vsyncpa [#allocation3 + $0x1], 1 }
 0x1c9   :  { %1680 = vsyncpa [#allocation4], 1 }
 0x1ca   :  { %1682 = vsyncpa [#allocation4 + $0x1], 1 }
 0x1cb   :  { %1683 = vsyncpa [#allocation7], 1 }
 0x1cc   :  { %1685 = vsyncpa [#allocation7 + $0x1], 1 }
 0x1cd   :  { %1686 = vsyncpa [#allocation10], 1 }
 0x1ce   :  { %1688 = vsyncpa [#allocation10 + $0x1], 1 }

</bundles_post_ra>
